<compile_context>
chip_gen: v6e
topology: v6e:2x2x1
jax: 0.10.0
libtpu: 0.0.40
codegen_flags: <defaults>
</compile_context>

<pallas_src>
import functools

import jax
import jax.numpy as jnp
from jax.experimental import pallas as pl
from jax.experimental.pallas import tpu as pltpu

# Raw (PyTorch) dims and lane-aligned padded dims.
D_IN = 1600                   # flattened 1x40x40 input; kept unpadded (full-dim block)
H1_RAW, H1 = 400, 512
H2 = 128
H3_RAW, H3 = 64, 128
D_OUT_RAW, D_OUT = 2, 128


def _round_up(x, m):
    return ((x + m - 1) // m) * m


def _pad2(a, shape, dtype=None):
    """Zero-pad a 2-D array to `shape` (top-left corner holds `a`)."""
    dtype = a.dtype if dtype is None else dtype
    out = jnp.zeros(shape, dtype)
    return out.at[: a.shape[0], : a.shape[1]].set(a.astype(dtype))


def policy_net_kernel(x_ref, w1_ref, b1_ref, w2_ref, b2_ref,
                      w3_ref, b3_ref, w4_ref, b4_ref,
                      scale_ref, offset_ref, o_ref):
    # x_ref: (TM, 1600) f32 -> cast to bf16 just before the first MXU dot.
    x = x_ref[...].astype(jnp.bfloat16)

    h1 = jnp.dot(x, w1_ref[...], preferred_element_type=jnp.float32) + b1_ref[...]
    h1 = jnp.maximum(h1, 0.0).astype(jnp.bfloat16)

    h2 = jnp.dot(h1, w2_ref[...], preferred_element_type=jnp.float32) + b2_ref[...]
    h2 = jnp.maximum(h2, 0.0).astype(jnp.bfloat16)

    h3 = jnp.dot(h2, w3_ref[...], preferred_element_type=jnp.float32) + b3_ref[...]
    h3 = jnp.maximum(h3, 0.0).astype(jnp.bfloat16)

    z4 = jnp.dot(h3, w4_ref[...], preferred_element_type=jnp.float32) + b4_ref[...]

    # Padded-lane epilogue: cols [0,1] carry (tanh*150+50, tanh*30); the rest
    # are scaled by 0 and sliced away in the wrapper.
    o_ref[...] = jnp.tanh(z4) * scale_ref[...] + offset_ref[...]


def prepare_params(params):
    """Pad raw f32 (in,out) weights/biases to lane-aligned bf16/f32 tiles."""
    w1, b1, w2, b2, w3, b3, w4, b4 = params
    w1p = _pad2(w1, (D_IN, H1), jnp.bfloat16)   # K stays 1600, matching raw x
    w2p = _pad2(w2, (H1, H2), jnp.bfloat16)
    w3p = _pad2(w3, (H2, H3), jnp.bfloat16)
    w4p = _pad2(w4, (H3, D_OUT), jnp.bfloat16)
    b1p = _pad2(b1, (1, H1), jnp.float32)
    b2p = _pad2(b2, (1, H2), jnp.float32)
    b3p = _pad2(b3, (1, H3), jnp.float32)
    b4p = _pad2(b4, (1, D_OUT), jnp.float32)
    scale = jnp.zeros((1, D_OUT), jnp.float32).at[0, 0].set(150.0).at[0, 1].set(30.0)
    offset = jnp.zeros((1, D_OUT), jnp.float32).at[0, 0].set(50.0)
    return (w1p, b1p, w2p, b2p, w3p, b3p, w4p, b4p, scale, offset)


def _default_tile_m(B):
    if B <= 256:
        # Single whole-batch block: block dims equal the full array dims, so no
        # (8,128) divisibility requirement, no padding, no ragged block.
        return B
    # Large batch: big tile to amortize the ~0.35us per-step overhead, capped
    # at 1024 rows (~22 MB VMEM incl. the double-buffered f32 x tile) and so
    # the grid keeps >= 2 steps for the two v7x TensorCores.
    # On v5e ~256 rows is already compute-bound; pass tile_m=256 explicitly.
    return max(256, min(1024, _round_up(pl.cdiv(B, 2), 16)))


@functools.partial(jax.jit, static_argnames=("tile_m",))
def policy_net_forward(x_nchw, padded_params, tile_m=None):
    """x_nchw: (B, 1, 40, 40) float32.  Returns (B, 2) float32."""
    B = x_nchw.shape[0]
    x_flat = x_nchw.reshape(B, -1)  # (B, 1600) == torch.flatten(input, 1); no pad/cast pass

    if tile_m is None:
        tile_m = _default_tile_m(B)

    (w1p, b1p, w2p, b2p, w3p, b3p, w4p, b4p, scale, offset) = padded_params

    def resident(shape):
        # Weight / bias / constant: full array, same block every grid step
        # (stays VMEM-resident; only the x / out tiles stream).
        return pl.BlockSpec(shape, lambda i: (0, 0))

    grid = (pl.cdiv(B, tile_m),)  # ragged last block handled by Pallas
    out_padded = pl.pallas_call(
        policy_net_kernel,
        out_shape=jax.ShapeDtypeStruct((B, D_OUT), jnp.float32),
        grid=grid,
        in_specs=[
            pl.BlockSpec((tile_m, D_IN), lambda i: (i, 0)),   # x tile (f32)
            resident((D_IN, H1)), resident((1, H1)),          # w1, b1
            resident((H1, H2)), resident((1, H2)),            # w2, b2
            resident((H2, H3)), resident((1, H3)),            # w3, b3
            resident((H3, D_OUT)), resident((1, D_OUT)),      # w4, b4
            resident((1, D_OUT)), resident((1, D_OUT)),       # scale, offset
        ],
        out_specs=pl.BlockSpec((tile_m, D_OUT), lambda i: (i, 0)),
        compiler_params=pltpu.CompilerParams(
            dimension_semantics=("parallel",),
            vmem_limit_bytes=48 * 1024 * 1024,
        ),
    )(x_flat, w1p, b1p, w2p, b2p, w3p, b3p, w4p, b4p, scale, offset)

    return out_padded[:, :D_OUT_RAW]


def init_params(key):
    """torch.nn.Linear default init U(-1/sqrt(in), 1/sqrt(in)).

    Weights stored transposed, i.e. (in_features, out_features), biases (1, out).
    """
    dims = [(D_IN, H1_RAW), (H1_RAW, H2), (H2, H3_RAW), (H3_RAW, D_OUT_RAW)]
    params = []
    for (fan_in, fan_out) in dims:
        key, kw, kb = jax.random.split(key, 3)
        bound = 1.0 / jnp.sqrt(float(fan_in))
        w = jax.random.uniform(kw, (fan_in, fan_out), jnp.float32, -bound, bound)
        b = jax.random.uniform(kb, (1, fan_out), jnp.float32, -bound, bound)
        params += [w, b]
    return tuple(params)


def reference_forward_f32(x_nchw, params):
    """Pure-f32 reference following the original PyTorch math exactly."""
    w1, b1, w2, b2, w3, b3, w4, b4 = params
    x = x_nchw.reshape(x_nchw.shape[0], -1)
    h = jnp.maximum(x @ w1 + b1, 0.0)
    h = jnp.maximum(h @ w2 + b2, 0.0)
    h = jnp.maximum(h @ w3 + b3, 0.0)
    z = h @ w4 + b4
    return jnp.stack([jnp.tanh(z[:, 0]) * 150.0 + 50.0,
                      jnp.tanh(z[:, 1]) * 30.0], axis=1)


def reference_forward_bf16(x_nchw, padded_params):
    """Pure-JAX reference with the same bf16/f32 padded math as the kernel."""
    (w1p, b1p, w2p, b2p, w3p, b3p, w4p, b4p, scale, offset) = padded_params
    B = x_nchw.shape[0]
    x = x_nchw.reshape(B, -1).astype(jnp.bfloat16)
    h = jnp.maximum(jnp.dot(x, w1p, preferred_element_type=jnp.float32) + b1p, 0.0)
    h = jnp.maximum(jnp.dot(h.astype(jnp.bfloat16), w2p,
                            preferred_element_type=jnp.float32) + b2p, 0.0)
    h = jnp.maximum(jnp.dot(h.astype(jnp.bfloat16), w3p,
                            preferred_element_type=jnp.float32) + b3p, 0.0)
    z = jnp.dot(h.astype(jnp.bfloat16), w4p,
                preferred_element_type=jnp.float32) + b4p
    return (jnp.tanh(z) * scale + offset)[:, :D_OUT_RAW]


if __name__ == "__main__":
    key = jax.random.PRNGKey(0)
    kx1, kx2, kp = jax.random.split(key, 3)

    params = init_params(kp)
    padded_params = prepare_params(params)

    # --- Small-batch path: single whole-array block (grid of 1). ---
    batch = 2
    x = jax.random.normal(kx1, (batch, 1, 40, 40), dtype=jnp.float32)
    out = jax.block_until_ready(policy_net_forward(x, padded_params))
    assert out.shape == (batch, 2)
    assert bool(jnp.all(jnp.isfinite(out)))
    ref16 = reference_forward_bf16(x, padded_params)
    ref32 = reference_forward_f32(x, params)
    assert jnp.allclose(out, ref16, atol=5e-2, rtol=1e-2), (out, ref16)
    # Pure-f32 reference: bf16 error is amplified by the *150 output scale,
    # so use an absolute tolerance sized for that (real bugs are >> 1.0 off).
    assert jnp.allclose(out, ref32, atol=1.0, rtol=2e-2), (out, ref32)

    # --- Ragged-last-block path: B not a multiple of tile_m. Verifies the
    # read-pad / masked-store behavior that the large-batch path relies on. ---
    batch2 = 18
    x2 = jax.random.normal(kx2, (batch2, 1, 40, 40), dtype=jnp.float32)
    out2 = jax.block_until_ready(policy_net_forward(x2, padded_params, tile_m=16))
    assert out2.shape == (batch2, 2)
    assert bool(jnp.all(jnp.isfinite(out2)))
    ref16_2 = reference_forward_bf16(x2, padded_params)
    ref32_2 = reference_forward_f32(x2, params)
    assert jnp.allclose(out2, ref16_2, atol=5e-2, rtol=1e-2), (out2, ref16_2)
    assert jnp.allclose(out2, ref32_2, atol=1.0, rtol=2e-2), (out2, ref32_2)

    print("KERNEL_OK")
</pallas_src>

<mosaic_0001>
module attributes {stable_mosaic.version = 11 : i64} {
  func.func @policy_net_kernel(%arg0: i32, %arg1: memref<2x1600xf32, #tpu.memory_space<vmem>>, %arg2: memref<1600x512xbf16, #tpu.memory_space<vmem>>, %arg3: memref<1x512xf32, #tpu.memory_space<vmem>>, %arg4: memref<512x128xbf16, #tpu.memory_space<vmem>>, %arg5: memref<1x128xf32, #tpu.memory_space<vmem>>, %arg6: memref<128x128xbf16, #tpu.memory_space<vmem>>, %arg7: memref<1x128xf32, #tpu.memory_space<vmem>>, %arg8: memref<128x128xbf16, #tpu.memory_space<vmem>>, %arg9: memref<1x128xf32, #tpu.memory_space<vmem>>, %arg10: memref<1x128xf32, #tpu.memory_space<vmem>>, %arg11: memref<1x128xf32, #tpu.memory_space<vmem>>, %arg12: memref<2x128xf32, #tpu.memory_space<vmem>>) attributes {dimension_semantics = [#tpu.dimension_semantics<parallel>], iteration_bounds = array<i64: 1>, scalar_prefetch = 0 : i64, scratch_operands = 0 : i64, tpu.core_type = #tpu.core_type<tc>, window_params = [{transform_indices = @transform_0, window_bounds = array<i64: 2, 1600>}, {pipeline_mode = #tpu.pipeline_mode<synchronous>, transform_indices = @transform_1, window_bounds = array<i64: 1600, 512>}, {pipeline_mode = #tpu.pipeline_mode<synchronous>, transform_indices = @transform_2, window_bounds = array<i64: 1, 512>}, {pipeline_mode = #tpu.pipeline_mode<synchronous>, transform_indices = @transform_3, window_bounds = array<i64: 512, 128>}, {pipeline_mode = #tpu.pipeline_mode<synchronous>, transform_indices = @transform_4, window_bounds = array<i64: 1, 128>}, {pipeline_mode = #tpu.pipeline_mode<synchronous>, transform_indices = @transform_5, window_bounds = array<i64: 128, 128>}, {pipeline_mode = #tpu.pipeline_mode<synchronous>, transform_indices = @transform_6, window_bounds = array<i64: 1, 128>}, {pipeline_mode = #tpu.pipeline_mode<synchronous>, transform_indices = @transform_7, window_bounds = array<i64: 128, 128>}, {pipeline_mode = #tpu.pipeline_mode<synchronous>, transform_indices = @transform_8, window_bounds = array<i64: 1, 128>}, {pipeline_mode = #tpu.pipeline_mode<synchronous>, transform_indices = @transform_9, window_bounds = array<i64: 1, 128>}, {pipeline_mode = #tpu.pipeline_mode<synchronous>, transform_indices = @transform_10, window_bounds = array<i64: 1, 128>}, {transform_indices = @transform_11, window_bounds = array<i64: 2, 128>}]} {
    %c0 = arith.constant 0 : index
    %c0_0 = arith.constant 0 : index
    %0 = vector.load %arg1[%c0, %c0_0] : memref<2x1600xf32, #tpu.memory_space<vmem>>, vector<2x1600xf32>
    %1 = arith.truncf %0 : vector<2x1600xf32> to vector<2x1600xbf16>
    %c0_1 = arith.constant 0 : index
    %c0_2 = arith.constant 0 : index
    %2 = vector.load %arg2[%c0_1, %c0_2] : memref<1600x512xbf16, #tpu.memory_space<vmem>>, vector<1600x512xbf16>
    %cst = arith.constant dense<0.000000e+00> : vector<2x512xf32>
    %3 = tpu.matmul %1, %2, %cst {dimension_numbers = #tpu.dot_dimension_numbers<[1], [0], [0], [1], [0, 0, 1, 1], [], []>} : vector<2x1600xbf16>, vector<1600x512xbf16>, vector<2x512xf32> -> vector<2x512xf32>
    %c0_3 = arith.constant 0 : index
    %c0_4 = arith.constant 0 : index
    %4 = vector.load %arg3[%c0_3, %c0_4] : memref<1x512xf32, #tpu.memory_space<vmem>>, vector<1x512xf32>
    %5 = vector.broadcast %4 : vector<1x512xf32> to vector<2x512xf32>
    %6 = arith.addf %3, %5 : vector<2x512xf32>
    %cst_5 = arith.constant 0.000000e+00 : f32
    %7 = vector.broadcast %cst_5 : f32 to vector<2x512xf32>
    %8 = arith.maximumf %6, %7 : vector<2x512xf32>
    %9 = arith.truncf %8 : vector<2x512xf32> to vector<2x512xbf16>
    %c0_6 = arith.constant 0 : index
    %c0_7 = arith.constant 0 : index
    %10 = vector.load %arg4[%c0_6, %c0_7] : memref<512x128xbf16, #tpu.memory_space<vmem>>, vector<512x128xbf16>
    %cst_8 = arith.constant dense<0.000000e+00> : vector<2x128xf32>
    %11 = tpu.matmul %9, %10, %cst_8 {dimension_numbers = #tpu.dot_dimension_numbers<[1], [0], [0], [1], [0, 0, 1, 1], [], []>} : vector<2x512xbf16>, vector<512x128xbf16>, vector<2x128xf32> -> vector<2x128xf32>
    %c0_9 = arith.constant 0 : index
    %c0_10 = arith.constant 0 : index
    %12 = vector.load %arg5[%c0_9, %c0_10] : memref<1x128xf32, #tpu.memory_space<vmem>>, vector<1x128xf32>
    %13 = vector.broadcast %12 : vector<1x128xf32> to vector<2x128xf32>
    %14 = arith.addf %11, %13 : vector<2x128xf32>
    %cst_11 = arith.constant 0.000000e+00 : f32
    %15 = vector.broadcast %cst_11 : f32 to vector<2x128xf32>
    %16 = arith.maximumf %14, %15 : vector<2x128xf32>
    %17 = arith.truncf %16 : vector<2x128xf32> to vector<2x128xbf16>
    %c0_12 = arith.constant 0 : index
    %c0_13 = arith.constant 0 : index
    %18 = vector.load %arg6[%c0_12, %c0_13] : memref<128x128xbf16, #tpu.memory_space<vmem>>, vector<128x128xbf16>
    %cst_14 = arith.constant dense<0.000000e+00> : vector<2x128xf32>
    %19 = tpu.matmul %17, %18, %cst_14 {dimension_numbers = #tpu.dot_dimension_numbers<[1], [0], [0], [1], [0, 0, 1, 1], [], []>} : vector<2x128xbf16>, vector<128x128xbf16>, vector<2x128xf32> -> vector<2x128xf32>
    %c0_15 = arith.constant 0 : index
    %c0_16 = arith.constant 0 : index
    %20 = vector.load %arg7[%c0_15, %c0_16] : memref<1x128xf32, #tpu.memory_space<vmem>>, vector<1x128xf32>
    %21 = vector.broadcast %20 : vector<1x128xf32> to vector<2x128xf32>
    %22 = arith.addf %19, %21 : vector<2x128xf32>
    %cst_17 = arith.constant 0.000000e+00 : f32
    %23 = vector.broadcast %cst_17 : f32 to vector<2x128xf32>
    %24 = arith.maximumf %22, %23 : vector<2x128xf32>
    %25 = arith.truncf %24 : vector<2x128xf32> to vector<2x128xbf16>
    %c0_18 = arith.constant 0 : index
    %c0_19 = arith.constant 0 : index
    %26 = vector.load %arg8[%c0_18, %c0_19] : memref<128x128xbf16, #tpu.memory_space<vmem>>, vector<128x128xbf16>
    %cst_20 = arith.constant dense<0.000000e+00> : vector<2x128xf32>
    %27 = tpu.matmul %25, %26, %cst_20 {dimension_numbers = #tpu.dot_dimension_numbers<[1], [0], [0], [1], [0, 0, 1, 1], [], []>} : vector<2x128xbf16>, vector<128x128xbf16>, vector<2x128xf32> -> vector<2x128xf32>
    %c0_21 = arith.constant 0 : index
    %c0_22 = arith.constant 0 : index
    %28 = vector.load %arg9[%c0_21, %c0_22] : memref<1x128xf32, #tpu.memory_space<vmem>>, vector<1x128xf32>
    %29 = vector.broadcast %28 : vector<1x128xf32> to vector<2x128xf32>
    %30 = arith.addf %27, %29 : vector<2x128xf32>
    %31 = math.tanh %30 : vector<2x128xf32>
    %c0_23 = arith.constant 0 : index
    %c0_24 = arith.constant 0 : index
    %32 = vector.load %arg10[%c0_23, %c0_24] : memref<1x128xf32, #tpu.memory_space<vmem>>, vector<1x128xf32>
    %33 = vector.broadcast %32 : vector<1x128xf32> to vector<2x128xf32>
    %34 = arith.mulf %31, %33 : vector<2x128xf32>
    %c0_25 = arith.constant 0 : index
    %c0_26 = arith.constant 0 : index
    %35 = vector.load %arg11[%c0_25, %c0_26] : memref<1x128xf32, #tpu.memory_space<vmem>>, vector<1x128xf32>
    %36 = vector.broadcast %35 : vector<1x128xf32> to vector<2x128xf32>
    %37 = arith.addf %34, %36 : vector<2x128xf32>
    %c0_27 = arith.constant 0 : index
    %c0_28 = arith.constant 0 : index
    %38 = vector.load %arg12[%c0_27, %c0_28] : memref<2x128xf32, #tpu.memory_space<vmem>>, vector<2x128xf32>
    tpu.vector_store %arg12[%c0_27, %c0_28], %37 {strides = array<i32>} : memref<2x128xf32, #tpu.memory_space<vmem>>, vector<2x128xf32>,
    return
  }
  func.func @transform_0(%arg0: i32) -> (i32, i32) {
    %c0_i32 = arith.constant 0 : i32
    %c0_i32_0 = arith.constant 0 : i32
    return %arg0, %c0_i32 : i32, i32
  }
  func.func @transform_1(%arg0: i32) -> (i32, i32) {
    %c0_i32 = arith.constant 0 : i32
    %c0_i32_0 = arith.constant 0 : i32
    %c0_i32_1 = arith.constant 0 : i32
    return %c0_i32, %c0_i32_0 : i32, i32
  }
  func.func @transform_2(%arg0: i32) -> (i32, i32) {
    %c0_i32 = arith.constant 0 : i32
    %c0_i32_0 = arith.constant 0 : i32
    %c0_i32_1 = arith.constant 0 : i32
    return %c0_i32, %c0_i32_0 : i32, i32
  }
  func.func @transform_3(%arg0: i32) -> (i32, i32) {
    %c0_i32 = arith.constant 0 : i32
    %c0_i32_0 = arith.constant 0 : i32
    %c0_i32_1 = arith.constant 0 : i32
    return %c0_i32, %c0_i32_0 : i32, i32
  }
  func.func @transform_4(%arg0: i32) -> (i32, i32) {
    %c0_i32 = arith.constant 0 : i32
    %c0_i32_0 = arith.constant 0 : i32
    %c0_i32_1 = arith.constant 0 : i32
    return %c0_i32, %c0_i32_0 : i32, i32
  }
  func.func @transform_5(%arg0: i32) -> (i32, i32) {
    %c0_i32 = arith.constant 0 : i32
    %c0_i32_0 = arith.constant 0 : i32
    %c0_i32_1 = arith.constant 0 : i32
    return %c0_i32, %c0_i32_0 : i32, i32
  }
  func.func @transform_6(%arg0: i32) -> (i32, i32) {
    %c0_i32 = arith.constant 0 : i32
    %c0_i32_0 = arith.constant 0 : i32
    %c0_i32_1 = arith.constant 0 : i32
    return %c0_i32, %c0_i32_0 : i32, i32
  }
  func.func @transform_7(%arg0: i32) -> (i32, i32) {
    %c0_i32 = arith.constant 0 : i32
    %c0_i32_0 = arith.constant 0 : i32
    %c0_i32_1 = arith.constant 0 : i32
    return %c0_i32, %c0_i32_0 : i32, i32
  }
  func.func @transform_8(%arg0: i32) -> (i32, i32) {
    %c0_i32 = arith.constant 0 : i32
    %c0_i32_0 = arith.constant 0 : i32
    %c0_i32_1 = arith.constant 0 : i32
    return %c0_i32, %c0_i32_0 : i32, i32
  }
  func.func @transform_9(%arg0: i32) -> (i32, i32) {
    %c0_i32 = arith.constant 0 : i32
    %c0_i32_0 = arith.constant 0 : i32
    %c0_i32_1 = arith.constant 0 : i32
    return %c0_i32, %c0_i32_0 : i32, i32
  }
  func.func @transform_10(%arg0: i32) -> (i32, i32) {
    %c0_i32 = arith.constant 0 : i32
    %c0_i32_0 = arith.constant 0 : i32
    %c0_i32_1 = arith.constant 0 : i32
    return %c0_i32, %c0_i32_0 : i32, i32
  }
  func.func @transform_11(%arg0: i32) -> (i32, i32) {
    %c0_i32 = arith.constant 0 : i32
    %c0_i32_0 = arith.constant 0 : i32
    return %arg0, %c0_i32 : i32, i32
  }
}

</mosaic_0001>

<bundles_post_ra>
// kernel: policy_net_forward.1
= control target key start
LH: loop header
LB: loop body
LE: loop exit
PB: predicated region body
PF: predicated region fallthrough
CT: control target
= control target key end

     0   :  { %16 = vsyncpa [#allocation3], 0  ;;  %s5591_s0 = inlined_call_operand.vmem [shape: f32[2,1600], index: 0, kind: input, shape index: {}]   ;;  %s5592_s1 = inlined_call_operand.hbm [shape: bf16[1600,512], index: 1, kind: input, shape index: {}]   ;;  %s5593_s2 = inlined_call_operand.hbm [shape: f32[1,512], index: 2, kind: input, shape index: {}]   ;;  %s5594_s3 = inlined_call_operand.hbm [shape: bf16[512,128], index: 3, kind: input, shape index: {}]   ;;  %s5595_s4 = inlined_call_operand.hbm [shape: f32[1,128], index: 4, kind: input, shape index: {}]   ;;  %s5596_s5 = inlined_call_operand.hbm [shape: bf16[128,128], index: 5, kind: input, shape index: {}]   ;;  %s5597_s6 = inlined_call_operand.hbm [shape: f32[1,128], index: 6, kind: input, shape index: {}]   ;;  %s5598_s7 = inlined_call_operand.hbm [shape: bf16[128,128], index: 7, kind: input, shape index: {}]   ;;  %s5599_s8 = inlined_call_operand.hbm [shape: f32[1,128], index: 8, kind: input, shape index: {}]   ;;  %s5600_s9 = inlined_call_operand.hbm [shape: f32[1,128], index: 9, kind: input, shape index: {}]   ;;  %s5601_s10 = inlined_call_operand.hbm [shape: f32[1,128], index: 10, kind: input, shape index: {}]   ;;  %s5602_s11 = inlined_call_operand.hbm [shape: f32[2,128], index: 11, kind: output, shape index: {}]  }
   0x1   :  { %17 = vsyncpa [#allocation6], 0 }
   0x2   :  { %18 = vsyncpa [#allocation9], 0 }
   0x3   :  { %19 = vsyncpa [#allocation12], 0 }
   0x4   :  { %20 = vsyncpa [#allocation15], 0 }
   0x5   :  { %21 = vsyncpa [#allocation18], 0 }
   0x6   :  { %22 = vsyncpa [#allocation4], 0  ;;  %s5336_s17 = smov [#allocation5]   ;;  %s5337_s19 = smov [#allocation8]  }
   0x7   :  { %s43_s18 = sshll.u32 %s5336_s17, 4  ;;  %s65_s20 = sshll.u32 %s5337_s19, 4  ;;  %s44_s18 = int_to_ptr.vmem [resolvable:$true] %s43_s18  ;;  %s66_s20 = int_to_ptr.vmem [resolvable:$true] %s65_s20 }
   0x8   :  { %s5110_s21 = scalar_lea.vmem %s44_s18, 64  ;;  %p5115_p1 = scmp.lt.s32.totalorder %s44_s18, %s44_s18 }
   0x9   :  { %p5111_p0 = scmp.ne.s32.totalorder %s44_s18, %s5110_s21  ;;  %p5116_p2 = scmp.lt.s32.totalorder %s5110_s21, %s5110_s21 }
   0xb   :  { %p5117_p3 = por %p5116_p2, %p5115_p1 }
   0xd   :  { %p5118_p4 = pnand %p5117_p3, %p5111_p0 }
   0xf   :  { %5121 = shalt.err (!%p5118_p4)
}
  0x10   :  { %46 = dma.hbm_to_vmem [thread:$0]  %s5593_s2, 64, %s44_s18, [#allocation6]  }
  0x11   :  { %s5130_s24 = scalar_lea.vmem %s66_s20, 16  ;;  %s5134_s25 = scalar_lea.vmem %s66_s20, 32 }
  0x12   :  { %p5131_p5 = scmp.ne.s32.totalorder %s66_s20, %s5130_s24  ;;  %p5135_p6 = scmp.lt.s32.totalorder %s66_s20, %s66_s20 }
  0x13   :  { %p5136_p7 = scmp.lt.s32.totalorder %s5134_s25, %s5130_s24 }
  0x15   :  { %p5137_p8 = por %p5136_p7, %p5135_p6 }
  0x17   :  { %p5138_p9 = pnand %p5137_p8, %p5131_p5 }
  0x19   :  { %5141 = shalt.err (!%p5138_p9)
}
  0x1a   :  { %68 = dma.hbm_to_vmem [thread:$0]  %s5595_s4, 16, %s66_s20, [#allocation9]  }
  0x1b   :  { %s5338_s28 = smov [#allocation11]   ;;  %s5339_s30 = smov [#allocation14]  }
  0x1c   :  { %s87_s29 = sshll.u32 %s5338_s28, 4  ;;  %s109_s12 = sshll.u32 %s5339_s30, 4  ;;  %s88_s29 = int_to_ptr.vmem [resolvable:$true] %s87_s29  ;;  %s110_s12 = int_to_ptr.vmem [resolvable:$true] %s109_s12 }
  0x1d   :  { %s5150_s13 = scalar_lea.vmem %s88_s29, 16  ;;  %s5154_s2 = scalar_lea.vmem %s88_s29, 32 }
  0x1e   :  { %p5151_p10 = scmp.ne.s32.totalorder %s88_s29, %s5150_s13  ;;  %p5155_p11 = scmp.lt.s32.totalorder %s88_s29, %s88_s29 }
  0x1f   :  { %p5156_p12 = scmp.lt.s32.totalorder %s5154_s2, %s5150_s13 }
  0x21   :  { %p5157_p13 = por %p5156_p12, %p5155_p11 }
  0x23   :  { %p5158_p0 = pnand %p5157_p13, %p5151_p10 }
  0x25   :  { %5161 = shalt.err (!%p5158_p0)
}
  0x26   :  { %90 = dma.hbm_to_vmem [thread:$0]  %s5597_s6, 16, %s88_s29, [#allocation12]  }
  0x27   :  { %s5170_s16 = scalar_lea.vmem %s110_s12, 16  ;;  %s5174_s4 = scalar_lea.vmem %s110_s12, 32 }
  0x28   :  { %p5171_p1 = scmp.ne.s32.totalorder %s110_s12, %s5170_s16  ;;  %p5175_p2 = scmp.lt.s32.totalorder %s110_s12, %s110_s12 }
  0x29   :  { %p5176_p3 = scmp.lt.s32.totalorder %s5174_s4, %s5170_s16 }
  0x2b   :  { %p5177_p4 = por %p5176_p3, %p5175_p2 }
  0x2d   :  { %p5178_p5 = pnand %p5177_p4, %p5171_p1 }
  0x2f   :  { %5181 = shalt.err (!%p5178_p5)
}
  0x30   :  { %112 = dma.hbm_to_vmem [thread:$0]  %s5599_s8, 16, %s110_s12, [#allocation15]  }
  0x31   :  { %s5340_s19 = smov [#allocation2]  }
  0x32   :  { %s30_s20 = sshll.u32 %s5340_s19, 4  ;;  %s31_s20 = int_to_ptr.vmem [resolvable:$true] %s30_s20 }
  0x33   :  { %s5190_s21 = scalar_lea.vmem %s31_s20, 51200  ;;  %p5195_p7 = scmp.lt.s32.totalorder %s31_s20, %s31_s20 }
  0x34   :  { %p5191_p6 = scmp.ne.s32.totalorder %s31_s20, %s5190_s21  ;;  %p5196_p8 = scmp.lt.s32.totalorder %s5190_s21, %s5190_s21 }
  0x36   :  { %p5197_p9 = por %p5196_p8, %p5195_p7 }
  0x38   :  { %p5198_p10 = pnand %p5197_p9, %p5191_p6 }
  0x3a   :  { %5201 = shalt.err (!%p5198_p10)
}
  0x3b   :  { %s5341_s6 = smov 256   ;;  %s5342_s22 = smov 16  }
  0x3c   :  { %36 = dma.hbm_to_vmem [thread:$0]  %s5592_s1, 51200, %s31_s20, [#allocation3], %s5341_s6, %s5341_s6, %s5342_s22  }
  0x3d   :  { %s5343_s25 = smov [#allocation7]  }
  0x3e   :  { %s52_s26 = sshll.u32 %s5343_s25, 4  ;;  %s53_s26 = int_to_ptr.vmem [resolvable:$true] %s52_s26 }
  0x3f   :  { %s5210_s8 = scalar_lea.vmem %s53_s26, 4096  ;;  %p5215_p12 = scmp.lt.s32.totalorder %s53_s26, %s53_s26 }
  0x40   :  { %p5211_p11 = scmp.ne.s32.totalorder %s53_s26, %s5210_s8  ;;  %p5216_p13 = scmp.lt.s32.totalorder %s5210_s8, %s5210_s8 }
  0x42   :  { %p5217_p0 = por %p5216_p13, %p5215_p12 }
  0x44   :  { %p5218_p1 = pnand %p5217_p0, %p5211_p11 }
  0x46   :  { %5221 = shalt.err (!%p5218_p1)
}
  0x47   :  { %s5344_s27 = smov 64   ;;  %s5345_s28 = smov 4  }
  0x48   :  { %58 = dma.hbm_to_vmem [thread:$0]  %s5594_s3, 4096, %s53_s26, [#allocation6], %s5344_s27, %s5344_s27, %s5345_s28  }
  0x49   :  { %s5346_s12 = smov [#allocation10]   ;;  %s5347_s2 = smov [#allocation13]  }
  0x4a   :  { %s74_s13 = sshll.u32 %s5346_s12, 4  ;;  %s96_s1 = sshll.u32 %s5347_s2, 4  ;;  %s75_s13 = int_to_ptr.vmem [resolvable:$true] %s74_s13  ;;  %s97_s1 = int_to_ptr.vmem [resolvable:$true] %s96_s1 }
  0x4b   :  { %s5230_s14 = scalar_lea.vmem %s75_s13, 1024  ;;  %p5235_p3 = scmp.lt.s32.totalorder %s75_s13, %s75_s13 }
  0x4c   :  { %p5231_p2 = scmp.ne.s32.totalorder %s75_s13, %s5230_s14  ;;  %p5236_p4 = scmp.lt.s32.totalorder %s5230_s14, %s5230_s14 }
  0x4e   :  { %p5237_p5 = por %p5236_p4, %p5235_p3 }
  0x50   :  { %p5238_p6 = pnand %p5237_p5, %p5231_p2 }
  0x52   :  { %5241 = shalt.err (!%p5238_p6)
}
  0x53   :  { %80 = dma.hbm_to_vmem [thread:$0]  %s5596_s5, 1024, %s75_s13, [#allocation9], %s5344_s27, %s5344_s27, %s5345_s28  }
  0x54   :  { %s5250_s4 = scalar_lea.vmem %s97_s1, 1024  ;;  %p5255_p8 = scmp.lt.s32.totalorder %s97_s1, %s97_s1 }
  0x55   :  { %p5251_p7 = scmp.ne.s32.totalorder %s97_s1, %s5250_s4  ;;  %p5256_p9 = scmp.lt.s32.totalorder %s5250_s4, %s5250_s4 }
  0x57   :  { %p5257_p10 = por %p5256_p9, %p5255_p8 }
  0x59   :  { %p5258_p11 = pnand %p5257_p10, %p5251_p7 }
  0x5b   :  { %5261 = shalt.err (!%p5258_p11)
}
  0x5c   :  { %102 = dma.hbm_to_vmem [thread:$0]  %s5598_s7, 1024, %s97_s1, [#allocation12], %s5344_s27, %s5344_s27, %s5345_s28  }
  0x5d   :  { %s5348_s18 = smov [#allocation16]   ;;  %s5349_s20 = smov [#allocation17]  }
  0x5e   :  { %s119_s19 = sshll.u32 %s5348_s18, 4  ;;  %s129_s21 = sshll.u32 %s5349_s20, 4  ;;  %s120_s19 = int_to_ptr.vmem [resolvable:$true] %s119_s19  ;;  %s130_s21 = int_to_ptr.vmem [resolvable:$true] %s129_s21 }
  0x5f   :  { %s5270_s6 = scalar_lea.vmem %s120_s19, 16  ;;  %s5274_s5 = scalar_lea.vmem %s120_s19, 32 }
  0x60   :  { %p5271_p12 = scmp.ne.s32.totalorder %s120_s19, %s5270_s6  ;;  %p5275_p13 = scmp.lt.s32.totalorder %s120_s19, %s120_s19 }
  0x61   :  { %p5276_p0 = scmp.lt.s32.totalorder %s5274_s5, %s5270_s6 }
  0x63   :  { %p5277_p1 = por %p5276_p0, %p5275_p13 }
  0x65   :  { %p5278_p2 = pnand %p5277_p1, %p5271_p12 }
  0x67   :  { %5281 = shalt.err (!%p5278_p2)
}
  0x68   :  { %122 = dma.hbm_to_vmem [thread:$0]  %s5600_s9, 16, %s120_s19, [#allocation15]  }
  0x69   :  { %s5290_s24 = scalar_lea.vmem %s130_s21, 16  ;;  %s5294_s7 = scalar_lea.vmem %s130_s21, 32 }
  0x6a   :  { %p5291_p3 = scmp.ne.s32.totalorder %s130_s21, %s5290_s24  ;;  %p5295_p4 = scmp.lt.s32.totalorder %s130_s21, %s130_s21 }
  0x6b   :  { %p5296_p5 = scmp.lt.s32.totalorder %s5294_s7, %s5290_s24 }
  0x6d   :  { %p5297_p6 = por %p5296_p5, %p5295_p4 }
  0x6f   :  { %p5298_p7 = pnand %p5297_p6, %p5291_p3 }
  0x71   :  { %5301 = shalt.err (!%p5298_p7)
}
  0x72   :  { %132 = dma.hbm_to_vmem [thread:$0]  %s5601_s10, 16, %s130_s21, [#allocation18]  }
  0x73   :  { %5322 = dma.done.wait [#allocation3], 51200  }
  0x74   :  { %5323 = vsyncadd [#allocation3], 4294916096 }
  0x75   :  { %5324 = dma.done.wait [#allocation6], 4160  }
  0x76   :  { %5325 = vsyncadd [#allocation6], 4294963136 }
  0x77   :  { %5326 = dma.done.wait [#allocation9], 1040  }
  0x78   :  { %5327 = vsyncadd [#allocation9], 4294966256 }
  0x79   :  { %5328 = dma.done.wait [#allocation12], 1040  }
  0x7a   :  { %5329 = vsyncadd [#allocation12], 4294966256 }
  0x7b   :  { %5330 = dma.done.wait [#allocation15], 32  }
  0x7c   :  { %5331 = vsyncadd [#allocation15], 4294967264 }
  0x7d   :  { %5332 = dma.done.wait [#allocation18], 16  }
  0x7e   :  { %5333 = vsyncadd [#allocation18], 4294967280  ;;  %v4448_v0 = vld [vmem:[#allocation2 + $0xe4] ss:$16 sps:$4 sm:$0xff]   ;;  %v4452_v2 = vld [vmem:[#allocation2 + $0xe0] ss:$16 sps:$4 sm:$0xff]   ;;  %v176_v38 = vlaneseq }
  0x7f   :  { %v4450_v1 = vld [vmem:[#allocation2 + $0x2e4] ss:$16 sps:$4 sm:$0xff]   ;;  %2682 = vmatprep.subr.bf16.mxu0 %v4448_v0  ;;  %v4453_v3 = vld [vmem:[#allocation2 + $0x2e0] ss:$16 sps:$4 sm:$0xff]   ;;  %v5350_v36 = vmov 1983009808  }
  0x80   :  { %2723 = vmatprep.subr.bf16.mxu1 %v4450_v1  ;;  %v4454_v4 = vld [vmem:[#allocation2 + $0xc4] ss:$16 sps:$4 sm:$0xff]   ;;  %2683 = vmatpush1.bf16.msra.mxu0 %v4452_v2  ;;  %v4458_v6 = vld [vmem:[#allocation2 + $0xc0] ss:$16 sps:$4 sm:$0xff]   ;;  %v174_v37 = vunpack.c.l.s4 %v5350_v36  ;;  %v5445_v43 = vshrl.u32 %v176_v38, 7  ;;  %vm2678_vm0 = vcmask 523264  }
  0x81   :  { %2724 = vmatpush1.bf16.msra.mxu1 %v4453_v3  ;;  %v4456_v5 = vld [vmem:[#allocation2 + $0x2c4] ss:$16 sps:$4 sm:$0xff]   ;;  %2684 = vmatprep.subr.bf16.mxu0 %v4454_v4  ;;  %v4459_v7 = vld [vmem:[#allocation2 + $0x2c0] ss:$16 sps:$4 sm:$0xff]   ;;  %vm5353_vm1 = vmmov 0  }
  0x82   :  { %2725 = vmatprep.subr.bf16.mxu1 %v4456_v5  ;;  %v4460_v8 = vld [vmem:[#allocation2 + $0xa4] ss:$16 sps:$4 sm:$0xff]   ;;  %v4464_v10 = vld [vmem:[#allocation2 + $0xa0] ss:$16 sps:$4 sm:$0xff]   ;;  %v175_v42 = vunpack.c.0.s8 %v174_v37 }
  0x83   :  { %v4462_v9 = vld [vmem:[#allocation2 + $0x2a4] ss:$16 sps:$4 sm:$0xff]   ;;  %v4465_v11 = vld [vmem:[#allocation2 + $0x2a0] ss:$16 sps:$4 sm:$0xff]  }
  0x84   :  { %2685 = vmatpush1.bf16.msra.mxu0 %v4458_v6  ;;  %v4466_v12 = vld [vmem:[#allocation2 + $0x84] ss:$16 sps:$4 sm:$0xff]   ;;  %v4470_v14 = vld [vmem:[#allocation2 + $0x80] ss:$16 sps:$4 sm:$0xff]   ;;  %v5448_v49 = vsub.s32 %v175_v42, %v5445_v43  ;;  %v165_v42 = vld [vmem:[%s5591_s0 + $0x8] sm:$0xff] }
  0x85   :  { %2726 = vmatpush1.bf16.msra.mxu1 %v4459_v7  ;;  %2686 = vmatprep.subr.bf16.mxu0 %v4460_v8  ;;  %v4468_v13 = vld [vmem:[#allocation2 + $0x284] ss:$16 sps:$4 sm:$0xff]   ;;  %v4471_v15 = vld [vmem:[#allocation2 + $0x280] ss:$16 sps:$4 sm:$0xff]  }
  0x86   :  { %2727 = vmatprep.subr.bf16.mxu1 %v4462_v9  ;;  %v4472_v16 = vld [vmem:[#allocation2 + $0x64] ss:$16 sps:$4 sm:$0xff]   ;;  %v4476_v18 = vld [vmem:[#allocation2 + $0x60] ss:$16 sps:$4 sm:$0xff]  }
  0x87   :  { %v4474_v17 = vld [vmem:[#allocation2 + $0x264] ss:$16 sps:$4 sm:$0xff]   ;;  %v4477_v19 = vld [vmem:[#allocation2 + $0x260] ss:$16 sps:$4 sm:$0xff]  }
  0x88   :  { %2687 = vmatpush1.bf16.msra.mxu0 %v4464_v10  ;;  %v4478_v20 = vld [vmem:[#allocation2 + $0x44] ss:$16 sps:$4 sm:$0xff]   ;;  %v4482_v22 = vld [vmem:[#allocation2 + $0x40] ss:$16 sps:$4 sm:$0xff]  }
  0x89   :  { %2728 = vmatpush1.bf16.msra.mxu1 %v4465_v11  ;;  %2688 = vmatprep.subr.bf16.mxu0 %v4466_v12  ;;  %v4480_v21 = vld [vmem:[#allocation2 + $0x244] ss:$16 sps:$4 sm:$0xff]   ;;  %v4483_v23 = vld [vmem:[#allocation2 + $0x240] ss:$16 sps:$4 sm:$0xff]  }
  0x8a   :  { %2729 = vmatprep.subr.bf16.mxu1 %v4468_v13  ;;  %v4484_v24 = vld [vmem:[#allocation2 + $0x24] ss:$16 sps:$4 sm:$0xff]   ;;  %v4488_v26 = vld [vmem:[#allocation2 + $0x20] ss:$16 sps:$4 sm:$0xff]  }
  0x8b   :  { %v4486_v25 = vld [vmem:[#allocation2 + $0x224] ss:$16 sps:$4 sm:$0xff]   ;;  %v4489_v27 = vld [vmem:[#allocation2 + $0x220] ss:$16 sps:$4 sm:$0xff]  }
  0x8c   :  { %2689 = vmatpush1.bf16.msra.mxu0 %v4470_v14  ;;  %v4490_v28 = vld [vmem:[#allocation2 + $0x4] ss:$16 sps:$4 sm:$0xff]   ;;  %v4494_v30 = vld [vmem:[#allocation2] ss:$16 sps:$4 sm:$0xff]  }
  0x8d   :  { %2730 = vmatpush1.bf16.msra.mxu1 %v4471_v15  ;;  %2690 = vmatprep.subr.bf16.mxu0 %v4472_v16  ;;  %v4492_v29 = vld [vmem:[#allocation2 + $0x204] ss:$16 sps:$4 sm:$0xff]   ;;  %v4495_v31 = vld [vmem:[#allocation2 + $0x200] ss:$16 sps:$4 sm:$0xff]  }
  0x8e   :  { %2731 = vmatprep.subr.bf16.mxu1 %v4474_v17  ;;  %v4496_v32 = vld [vmem:[#allocation2 + $0x1e4] ss:$16 sps:$4 sm:$0xff]   ;;  %v4500_v34 = vld [vmem:[#allocation2 + $0x1e0] ss:$16 sps:$4 sm:$0xff]  }
  0x8f   :  { %v4498_v33 = vld [vmem:[#allocation2 + $0x3e4] ss:$16 sps:$4 sm:$0xff]   ;;  %v4501_v35 = vld [vmem:[#allocation2 + $0x3e0] ss:$16 sps:$4 sm:$0xff]  }
  0x90   :  { %2691 = vmatpush1.bf16.msra.mxu0 %v4476_v18  ;;  %v4502_v39 = vld [vmem:[#allocation2 + $0x1c4] ss:$16 sps:$4 sm:$0xff]   ;;  %v4506_v41 = vld [vmem:[#allocation2 + $0x1c0] ss:$16 sps:$4 sm:$0xff]  }
  0x91   :  { %2732 = vmatpush1.bf16.msra.mxu1 %v4477_v19  ;;  %2692 = vmatprep.subr.bf16.mxu0 %v4478_v20  ;;  %v4504_v40 = vld [vmem:[#allocation2 + $0x3c4] ss:$16 sps:$4 sm:$0xff]   ;;  %v4507_v44 = vld [vmem:[#allocation2 + $0x3c0] ss:$16 sps:$4 sm:$0xff]  }
  0x92   :  { %2733 = vmatprep.subr.bf16.mxu1 %v4480_v21  ;;  %v4508_v45 = vld [vmem:[#allocation2 + $0x1a4] ss:$16 sps:$4 sm:$0xff]   ;;  %v4512_v47 = vld [vmem:[#allocation2 + $0x1a0] ss:$16 sps:$4 sm:$0xff]  }
  0x93   :  { %v4510_v46 = vld [vmem:[#allocation2 + $0x3a4] ss:$16 sps:$4 sm:$0xff]   ;;  %v4513_v48 = vld [vmem:[#allocation2 + $0x3a0] ss:$16 sps:$4 sm:$0xff]  }
  0x94   :  { %2693 = vmatpush1.bf16.msra.mxu0 %v4482_v22  ;;  %v4514_v50 = vld [vmem:[#allocation2 + $0x184] ss:$16 sps:$4 sm:$0xff]   ;;  %v4518_v53 = vld [vmem:[#allocation2 + $0x180] ss:$16 sps:$4 sm:$0xff]  }
  0x95   :  { %2734 = vmatpush1.bf16.msra.mxu1 %v4483_v23  ;;  %2694 = vmatprep.subr.bf16.mxu0 %v4484_v24  ;;  %v4516_v51 = vld [vmem:[#allocation2 + $0x384] ss:$16 sps:$4 sm:$0xff]   ;;  %v4519_v56 = vld [vmem:[#allocation2 + $0x380] ss:$16 sps:$4 sm:$0xff]  }
  0x96   :  { %2735 = vmatprep.subr.bf16.mxu1 %v4486_v25  ;;  %v164_v52 = vld [vmem:[%s5591_s0] sm:$0xff] }
  0x97   :  { %v179_v54 = vrot.slane %v164_v52, %v5448_v49  ;;  %v172_v55 = vcombine.high %v164_v52, %v164_v52  ;;  %v4520_v57 = vld [vmem:[#allocation2 + $0x164] ss:$16 sps:$4 sm:$0xff]   ;;  %v4524_v61 = vld [vmem:[#allocation2 + $0x160] ss:$16 sps:$4 sm:$0xff]  }
  0x98   :  { %2695 = vmatpush1.bf16.msra.mxu0 %v4488_v26  ;;  %v4522_v58 = vld [vmem:[#allocation2 + $0x364] ss:$16 sps:$4 sm:$0xff]   ;;  %v4525_v0 = vld [vmem:[#allocation2 + $0x360] ss:$16 sps:$4 sm:$0xff]  }
  0x99   :  { %2736 = vmatpush1.bf16.msra.mxu1 %v4489_v27  ;;  %2696 = vmatprep.subr.bf16.mxu0 %v4490_v28  ;;  %v187_v59 = vcombine.high %v179_v54, %v179_v54  ;;  %v186_v60 = vrot.slane %v172_v55, %v5448_v49  ;;  %v4526_v1 = vld [vmem:[#allocation2 + $0x144] ss:$16 sps:$4 sm:$0xff]   ;;  %v4530_v4 = vld [vmem:[#allocation2 + $0x140] ss:$16 sps:$4 sm:$0xff]   ;;  %v5461_v16 = vpack.c.bf16 %v179_v54, %v179_v54 }
  0x9a   :  { %2737 = vmatprep.subr.bf16.mxu1 %v4492_v29  ;;  %v4528_v2 = vld [vmem:[#allocation2 + $0x344] ss:$16 sps:$4 sm:$0xff]   ;;  %v4531_v5 = vld [vmem:[#allocation2 + $0x340] ss:$16 sps:$4 sm:$0xff]  }
  0x9b   :  { %v5455_v62 = vpack.c.bf16 %v187_v59, %v187_v59  ;;  %v188_v63 = vcombine.high %v186_v60, %v186_v60  ;;  %v4532_v6 = vld [vmem:[#allocation2 + $0x124] ss:$16 sps:$4 sm:$0xff]   ;;  %v4536_v8 = vld [vmem:[#allocation2 + $0x120] ss:$16 sps:$4 sm:$0xff]   ;;  %v5463_v17 = vpack.c.bf16 %v186_v60, %v186_v60 }
  0x9c   :  { %2697 = vmatpush1.bf16.msra.mxu0 %v4494_v30  ;;  %v4534_v7 = vld [vmem:[#allocation2 + $0x324] ss:$16 sps:$4 sm:$0xff]   ;;  %v4537_v9 = vld [vmem:[#allocation2 + $0x320] ss:$16 sps:$4 sm:$0xff]  }
  0x9d   :  { %2738 = vmatpush1.bf16.msra.mxu1 %v4495_v31  ;;  %2698 = vmatprep.subr.bf16.mxu0 %v4496_v32  ;;  %v5457_v3 = vpack.c.bf16 %v188_v63, %v188_v63  ;;  %v4538_v10 = vld [vmem:[#allocation2 + $0x104] ss:$16 sps:$4 sm:$0xff]   ;;  %v4542_v12 = vld [vmem:[#allocation2 + $0x100] ss:$16 sps:$4 sm:$0xff]  }
  0x9e   :  { %2739 = vmatprep.subr.bf16.mxu1 %v4498_v33  ;;  %2714 = vmatprep.mubr.bf16.mxu0 %v5455_v62  ;;  %v4540_v11 = vld [vmem:[#allocation2 + $0x304] ss:$16 sps:$4 sm:$0xff]   ;;  %v4543_v13 = vld [vmem:[#allocation2 + $0x300] ss:$16 sps:$4 sm:$0xff]  }
  0x9f   :  { %2755 = vmatprep.mubr.bf16.mxu1 %v5457_v3  ;;  %v4547_v14 = vld [vmem:[#allocation2 + $0x4e4] ss:$16 sps:$4 sm:$0xff]   ;;  %v4545_v18 = vld [vmem:[#allocation2 + $0x4e0] ss:$16 sps:$4 sm:$0xff]  }
  0xa0   :  { %2699 = vmatpush2.bf16.msra.mxu0 %v4500_v34  ;;  %v4550_v15 = vld [vmem:[#allocation2 + $0x6e4] ss:$16 sps:$4 sm:$0xff]   ;;  %v4548_v19 = vld [vmem:[#allocation2 + $0x6e0] ss:$16 sps:$4 sm:$0xff]  }
  0xa1   :  { %2740 = vmatpush2.bf16.msra.mxu1 %v4501_v35  ;;  %2700 = vmatprep.subr.bf16.mxu0 %v4502_v39  ;;  %v4553_v20 = vld [vmem:[#allocation2 + $0x4c4] ss:$16 sps:$4 sm:$0xff]   ;;  %v4551_v22 = vld [vmem:[#allocation2 + $0x4c0] ss:$16 sps:$4 sm:$0xff]  }
  0xa2   :  { %2741 = vmatprep.subr.bf16.mxu1 %v4504_v40  ;;  %v4556_v21 = vld [vmem:[#allocation2 + $0x6c4] ss:$16 sps:$4 sm:$0xff]   ;;  %v4554_v23 = vld [vmem:[#allocation2 + $0x6c0] ss:$16 sps:$4 sm:$0xff]  }
  0xa3   :  { %v4559_v24 = vld [vmem:[#allocation2 + $0x4a4] ss:$16 sps:$4 sm:$0xff]   ;;  %v4557_v26 = vld [vmem:[#allocation2 + $0x4a0] ss:$16 sps:$4 sm:$0xff]  }
  0xa4   :  { %2701 = vmatpush2.bf16.msra.mxu0 %v4506_v41  ;;  %v4562_v25 = vld [vmem:[#allocation2 + $0x6a4] ss:$16 sps:$4 sm:$0xff]   ;;  %v4560_v27 = vld [vmem:[#allocation2 + $0x6a0] ss:$16 sps:$4 sm:$0xff]  }
  0xa5   :  { %2742 = vmatpush2.bf16.msra.mxu1 %v4507_v44  ;;  %2702 = vmatprep.subr.bf16.mxu0 %v4508_v45  ;;  %v4565_v28 = vld [vmem:[#allocation2 + $0x484] ss:$16 sps:$4 sm:$0xff]   ;;  %v4563_v30 = vld [vmem:[#allocation2 + $0x480] ss:$16 sps:$4 sm:$0xff]   ;;  %v5471_v44 = vrot.slane %v165_v42, %v5448_v49  ;;  %v189_v45 = vcombine.high %v165_v42, %v165_v42 }
  0xa6   :  { %2743 = vmatprep.subr.bf16.mxu1 %v4510_v46  ;;  %v4568_v29 = vld [vmem:[#allocation2 + $0x684] ss:$16 sps:$4 sm:$0xff]   ;;  %v4566_v31 = vld [vmem:[#allocation2 + $0x680] ss:$16 sps:$4 sm:$0xff]  }
  0xa7   :  { %v4571_v32 = vld [vmem:[#allocation2 + $0x464] ss:$16 sps:$4 sm:$0xff]   ;;  %v4569_v34 = vld [vmem:[#allocation2 + $0x460] ss:$16 sps:$4 sm:$0xff]  }
  0xa8   :  { %2703 = vmatpush2.bf16.msra.mxu0 %v4512_v47  ;;  %v4574_v33 = vld [vmem:[#allocation2 + $0x664] ss:$16 sps:$4 sm:$0xff]   ;;  %v4572_v35 = vld [vmem:[#allocation2 + $0x660] ss:$16 sps:$4 sm:$0xff]  }
  0xa9   :  { %2744 = vmatpush2.bf16.msra.mxu1 %v4513_v48  ;;  %2704 = vmatprep.subr.bf16.mxu0 %v4514_v50  ;;  %v4577_v36 = vld [vmem:[#allocation2 + $0x444] ss:$16 sps:$4 sm:$0xff]   ;;  %v4575_v38 = vld [vmem:[#allocation2 + $0x440] ss:$16 sps:$4 sm:$0xff]   ;;  %v204_v48 = vcombine.high %v5471_v44, %v5471_v44  ;;  %v5476_v50 = vrot.slane %v189_v45, %v5448_v49 }
  0xaa   :  { %2745 = vmatprep.subr.bf16.mxu1 %v4516_v51  ;;  %v4580_v37 = vld [vmem:[#allocation2 + $0x644] ss:$16 sps:$4 sm:$0xff]   ;;  %v4578_v39 = vld [vmem:[#allocation2 + $0x640] ss:$16 sps:$4 sm:$0xff]  }
  0xab   :  { %v4583_v40 = vld [vmem:[#allocation2 + $0x424] ss:$16 sps:$4 sm:$0xff]   ;;  %v4581_v46 = vld [vmem:[#allocation2 + $0x420] ss:$16 sps:$4 sm:$0xff]   ;;  %v205_v54 = vcombine.high %v5476_v50, %v5476_v50 }
  0xac   :  { %2705 = vmatpush2.bf16.msra.mxu0 %v4518_v53  ;;  %v4586_v41 = vld [vmem:[#allocation2 + $0x624] ss:$16 sps:$4 sm:$0xff]   ;;  %v4584_v47 = vld [vmem:[#allocation2 + $0x620] ss:$16 sps:$4 sm:$0xff]   ;;  %v5478_v53 = vpack.c.bf16 %v204_v48, %v204_v48 }
  0xad   :  { %2746 = vmatpush2.bf16.msra.mxu1 %v4519_v56  ;;  %2706 = vmatprep.subr.bf16.mxu0 %v4520_v57  ;;  %v4589_v51 = vld [vmem:[#allocation2 + $0x404] ss:$16 sps:$4 sm:$0xff]   ;;  %v4587_v55 = vld [vmem:[#allocation2 + $0x400] ss:$16 sps:$4 sm:$0xff]   ;;  %v5482_v57 = vpack.c.bf16 %v205_v54, %v205_v54 }
  0xae   :  { %2747 = vmatprep.subr.bf16.mxu1 %v4522_v58  ;;  %v4592_v52 = vld [vmem:[#allocation2 + $0x604] ss:$16 sps:$4 sm:$0xff]   ;;  %v4590_v56 = vld [vmem:[#allocation2 + $0x600] ss:$16 sps:$4 sm:$0xff]  }
  0xaf   :  { %v4595_v58 = vld [vmem:[#allocation2 + $0x5e4] ss:$16 sps:$4 sm:$0xff]   ;;  %v4593_v60 = vld [vmem:[#allocation2 + $0x5e0] ss:$16 sps:$4 sm:$0xff]  }
  0xb0   :  { %2707 = vmatpush2.bf16.msra.mxu0 %v4524_v61  ;;  %v4598_v59 = vld [vmem:[#allocation2 + $0x7e4] ss:$16 sps:$4 sm:$0xff]   ;;  %v4596_v61 = vld [vmem:[#allocation2 + $0x7e0] ss:$16 sps:$4 sm:$0xff]  }
  0xb1   :  { %2748 = vmatpush2.bf16.msra.mxu1 %v4525_v0  ;;  %2708 = vmatprep.subr.bf16.mxu0 %v4526_v1  ;;  %v4601_v63 = vld [vmem:[#allocation2 + $0x5c4] ss:$16 sps:$4 sm:$0xff]   ;;  %v4599_v1 = vld [vmem:[#allocation2 + $0x5c0] ss:$16 sps:$4 sm:$0xff]  }
  0xb2   :  { %2749 = vmatprep.subr.bf16.mxu1 %v4528_v2  ;;  %v4604_v0 = vld [vmem:[#allocation2 + $0x7c4] ss:$16 sps:$4 sm:$0xff]   ;;  %v4602_v2 = vld [vmem:[#allocation2 + $0x7c0] ss:$16 sps:$4 sm:$0xff]  }
  0xb3   :  { %v4651_v45 = vld [vmem:[#allocation2 + $0xac0] ss:$16 sps:$4 sm:$0xff]   ;;  %v4662_v54 = vld [vmem:[#allocation2 + $0x884] ss:$16 sps:$4 sm:$0xff]  }
  0xb4   :  { %2709 = vmatpush2.bf16.msra.mxu0 %v4530_v4  ;;  %v4607_v4 = vld [vmem:[#allocation2 + $0x5a4] ss:$16 sps:$4 sm:$0xff]  }
  0xb5   :  { %2750 = vmatpush2.bf16.msra.mxu1 %v4531_v5  ;;  %2710 = vmatprep.subr.bf16.mxu0 %v4532_v6  ;;  %v4610_v5 = vld [vmem:[#allocation2 + $0x7a4] ss:$16 sps:$4 sm:$0xff]   ;;  %v4605_v6 = vld [vmem:[#allocation2 + $0x5a0] ss:$16 sps:$4 sm:$0xff]  }
  0xb6   :  { %2751 = vmatprep.subr.bf16.mxu1 %v4534_v7  ;;  %v4608_v7 = vld [vmem:[#allocation2 + $0x7a0] ss:$16 sps:$4 sm:$0xff]  }
  0xb8   :  { %2711 = vmatpush2.bf16.msra.mxu0 %v4536_v8  ;;  %v4613_v8 = vld [vmem:[#allocation2 + $0x584] ss:$16 sps:$4 sm:$0xff]  }
  0xb9   :  { %2752 = vmatpush2.bf16.msra.mxu1 %v4537_v9  ;;  %2712 = vmatprep.subr.bf16.mxu0 %v4538_v10  ;;  %v4616_v9 = vld [vmem:[#allocation2 + $0x784] ss:$16 sps:$4 sm:$0xff]   ;;  %v4611_v10 = vld [vmem:[#allocation2 + $0x580] ss:$16 sps:$4 sm:$0xff]  }
  0xba   :  { %2753 = vmatprep.subr.bf16.mxu1 %v4540_v11  ;;  %v4614_v11 = vld [vmem:[#allocation2 + $0x780] ss:$16 sps:$4 sm:$0xff]  }
  0xbc   :  { %2713 = vmatpush2.bf16.msra.mxu0 %v4542_v12  ;;  %v4619_v12 = vld [vmem:[#allocation2 + $0x564] ss:$16 sps:$4 sm:$0xff]  }
  0xbd   :  { %2754 = vmatpush2.bf16.msra.mxu1 %v4543_v13  ;;  %2764 = vmatprep.subr.bf16.mxu0 %v4547_v14  ;;  %v4622_v13 = vld [vmem:[#allocation2 + $0x764] ss:$16 sps:$4 sm:$0xff]   ;;  %v4617_v14 = vld [vmem:[#allocation2 + $0x560] ss:$16 sps:$4 sm:$0xff]  }
  0xbe   :  { %2805 = vmatprep.subr.bf16.mxu1 %v4550_v15  ;;  %v4620_v15 = vld [vmem:[#allocation2 + $0x760] ss:$16 sps:$4 sm:$0xff]  }
  0xbf   :  { %2715 = vmatmul.mubr.bf16.vlgmr.msra.gmra.mxu0 %v5461_v16 }
  0xc0   :  { %2756 = vmatmul.mubr.bf16.vlgmr.msra.gmra.mxu1 %v5463_v17  ;;  %2765 = vmatpush1.bf16.msra.mxu0 %v4545_v18  ;;  %v4625_v18 = vld [vmem:[#allocation2 + $0x544] ss:$16 sps:$4 sm:$0xff]  }
  0xc1   :  { %2806 = vmatpush1.bf16.msra.mxu1 %v4548_v19  ;;  %2766 = vmatprep.subr.bf16.mxu0 %v4553_v20  ;;  %v4628_v19 = vld [vmem:[#allocation2 + $0x744] ss:$16 sps:$4 sm:$0xff]   ;;  %v4623_v20 = vld [vmem:[#allocation2 + $0x540] ss:$16 sps:$4 sm:$0xff]  }
  0xc2   :  { %2807 = vmatprep.subr.bf16.mxu1 %v4556_v21  ;;  %2796 = vmatprep.mubr.bf16.mxu0 %v5478_v53  ;;  %v4626_v21 = vld [vmem:[#allocation2 + $0x740] ss:$16 sps:$4 sm:$0xff]  }
  0xc3   :  { %2837 = vmatprep.mubr.bf16.mxu1 %v5482_v57 }
  0xc4   :  { %2767 = vmatpush1.bf16.msra.mxu0 %v4551_v22  ;;  %v4631_v22 = vld [vmem:[#allocation2 + $0x524] ss:$16 sps:$4 sm:$0xff]  }
  0xc5   :  { %2808 = vmatpush1.bf16.msra.mxu1 %v4554_v23  ;;  %2768 = vmatprep.subr.bf16.mxu0 %v4559_v24  ;;  %v4634_v23 = vld [vmem:[#allocation2 + $0x724] ss:$16 sps:$4 sm:$0xff]   ;;  %v4629_v24 = vld [vmem:[#allocation2 + $0x520] ss:$16 sps:$4 sm:$0xff]  }
  0xc6   :  { %2809 = vmatprep.subr.bf16.mxu1 %v4562_v25  ;;  %v4632_v25 = vld [vmem:[#allocation2 + $0x720] ss:$16 sps:$4 sm:$0xff]  }
  0xc8   :  { %2769 = vmatpush1.bf16.msra.mxu0 %v4557_v26  ;;  %v4637_v26 = vld [vmem:[#allocation2 + $0x504] ss:$16 sps:$4 sm:$0xff]  }
  0xc9   :  { %2810 = vmatpush1.bf16.msra.mxu1 %v4560_v27  ;;  %2770 = vmatprep.subr.bf16.mxu0 %v4565_v28  ;;  %v4640_v27 = vld [vmem:[#allocation2 + $0x704] ss:$16 sps:$4 sm:$0xff]   ;;  %v4635_v28 = vld [vmem:[#allocation2 + $0x500] ss:$16 sps:$4 sm:$0xff]  }
  0xca   :  { %2811 = vmatprep.subr.bf16.mxu1 %v4568_v29  ;;  %v4638_v29 = vld [vmem:[#allocation2 + $0x700] ss:$16 sps:$4 sm:$0xff]  }
  0xcc   :  { %2771 = vmatpush1.bf16.msra.mxu0 %v4563_v30  ;;  %v4644_v30 = vld [vmem:[#allocation2 + $0x8e4] ss:$16 sps:$4 sm:$0xff]  }
  0xcd   :  { %2812 = vmatpush1.bf16.msra.mxu1 %v4566_v31  ;;  %2772 = vmatprep.subr.bf16.mxu0 %v4571_v32  ;;  %v4647_v31 = vld [vmem:[#allocation2 + $0xae4] ss:$16 sps:$4 sm:$0xff]   ;;  %v5488_v32 = vpack.c.bf16 %v5471_v44, %v5471_v44 }
  0xce   :  { %2813 = vmatprep.subr.bf16.mxu1 %v4574_v33  ;;  %v5492_v33 = vpack.c.bf16 %v5476_v50, %v5476_v50 }
  0xd0   :  { %2773 = vmatpush1.bf16.msra.mxu0 %v4569_v34  ;;  %v4642_v34 = vld [vmem:[#allocation2 + $0x8e0] ss:$16 sps:$4 sm:$0xff]  }
  0xd1   :  { %2814 = vmatpush1.bf16.msra.mxu1 %v4572_v35  ;;  %2774 = vmatprep.subr.bf16.mxu0 %v4577_v36  ;;  %v4645_v35 = vld [vmem:[#allocation2 + $0xae0] ss:$16 sps:$4 sm:$0xff]   ;;  %v4650_v36 = vld [vmem:[#allocation2 + $0x8c4] ss:$16 sps:$4 sm:$0xff]  }
  0xd2   :  { %2815 = vmatprep.subr.bf16.mxu1 %v4580_v37  ;;  %v166_v37 = vld [vmem:[%s5591_s0 + $0x10] sm:$0xff] }
  0xd4   :  { %2775 = vmatpush1.bf16.msra.mxu0 %v4575_v38  ;;  %v4653_v38 = vld [vmem:[#allocation2 + $0xac4] ss:$16 sps:$4 sm:$0xff]  }
  0xd5   :  { %2816 = vmatpush1.bf16.msra.mxu1 %v4578_v39  ;;  %2776 = vmatprep.subr.bf16.mxu0 %v4583_v40  ;;  %v5498_v39 = vrot.slane %v166_v37, %v5448_v49  ;;  %v206_v40 = vcombine.high %v166_v37, %v166_v37  ;;  %v4722_v37 = vld [vmem:[#allocation2 + $0x944] ss:$16 sps:$4 sm:$0xff]  }
  0xd6   :  { %2817 = vmatprep.subr.bf16.mxu1 %v4586_v41  ;;  %v4648_v41 = vld [vmem:[#allocation2 + $0x8c0] ss:$16 sps:$4 sm:$0xff]  }
  0xd7   :  { %v221_v42 = vcombine.high %v5498_v39, %v5498_v39  ;;  %v5505_v44 = vrot.slane %v206_v40, %v5448_v49  ;;  %v4657_v49 = vld [vmem:[#allocation2 + $0xaa0] ss:$16 sps:$4 sm:$0xff]  }
  0xd8   :  { %2777 = vmatpush1.bf16.msra.mxu0 %v4581_v46  ;;  %v4656_v46 = vld [vmem:[#allocation2 + $0x8a4] ss:$16 sps:$4 sm:$0xff]   ;;  %v4720_v40 = vld [vmem:[#allocation2 + $0x940] ss:$16 sps:$4 sm:$0xff]  }
  0xd9   :  { %2818 = vmatpush1.bf16.msra.mxu1 %v4584_v47  ;;  %2778 = vmatprep.subr.bf16.mxu0 %v4589_v51  ;;  %v4659_v47 = vld [vmem:[#allocation2 + $0xaa4] ss:$16 sps:$4 sm:$0xff]   ;;  %v5507_v48 = vpack.c.bf16 %v221_v42, %v221_v42  ;;  %v222_v50 = vcombine.high %v5505_v44, %v5505_v44  ;;  %v4654_v51 = vld [vmem:[#allocation2 + $0x8a0] ss:$16 sps:$4 sm:$0xff]  }
  0xda   :  { %2819 = vmatprep.subr.bf16.mxu1 %v4592_v52  ;;  %v4728_v42 = vld [vmem:[#allocation2 + $0x924] ss:$16 sps:$4 sm:$0xff]  }
  0xdb   :  { %v5512_v52 = vpack.c.bf16 %v222_v50, %v222_v50  ;;  %v4734_v50 = vld [vmem:[#allocation2 + $0x904] ss:$16 sps:$4 sm:$0xff]  }
  0xdc   :  { %2779 = vmatpush1.bf16.msra.mxu0 %v4587_v55  ;;  %v4665_v55 = vld [vmem:[#allocation2 + $0xa84] ss:$16 sps:$4 sm:$0xff]  }
  0xdd   :  { %2820 = vmatpush1.bf16.msra.mxu1 %v4590_v56  ;;  %2780 = vmatprep.subr.bf16.mxu0 %v4595_v58  ;;  %v4660_v56 = vld [vmem:[#allocation2 + $0x880] ss:$16 sps:$4 sm:$0xff]  }
  0xde   :  { %2821 = vmatprep.subr.bf16.mxu1 %v4598_v59  ;;  %v4663_v58 = vld [vmem:[#allocation2 + $0xa80] ss:$16 sps:$4 sm:$0xff]   ;;  %v4668_v59 = vld [vmem:[#allocation2 + $0x864] ss:$16 sps:$4 sm:$0xff]  }
  0xe0   :  { %2781 = vmatpush2.bf16.msra.mxu0 %v4593_v60  ;;  %v4671_v60 = vld [vmem:[#allocation2 + $0xa64] ss:$16 sps:$4 sm:$0xff]  }
  0xe1   :  { %2822 = vmatpush2.bf16.msra.mxu1 %v4596_v61  ;;  %2782 = vmatprep.subr.bf16.mxu0 %v4601_v63  ;;  %v4666_v61 = vld [vmem:[#allocation2 + $0x860] ss:$16 sps:$4 sm:$0xff]  }
  0xe2   :  { %2823 = vmatprep.subr.bf16.mxu1 %v4604_v0  ;;  %v4669_v63 = vld [vmem:[#allocation2 + $0xa60] ss:$16 sps:$4 sm:$0xff]   ;;  %v4674_v0 = vld [vmem:[#allocation2 + $0x844] ss:$16 sps:$4 sm:$0xff]  }
  0xe4   :  { %2783 = vmatpush2.bf16.msra.mxu0 %v4599_v1  ;;  %v4677_v1 = vld [vmem:[#allocation2 + $0xa44] ss:$16 sps:$4 sm:$0xff]  }
  0xe5   :  { %2824 = vmatpush2.bf16.msra.mxu1 %v4602_v2  ;;  %2784 = vmatprep.subr.bf16.mxu0 %v4607_v4  ;;  %v4672_v2 = vld [vmem:[#allocation2 + $0x840] ss:$16 sps:$4 sm:$0xff]  }
  0xe6   :  { %2825 = vmatprep.subr.bf16.mxu1 %v4610_v5  ;;  %v4675_v4 = vld [vmem:[#allocation2 + $0xa40] ss:$16 sps:$4 sm:$0xff]   ;;  %v4680_v5 = vld [vmem:[#allocation2 + $0x824] ss:$16 sps:$4 sm:$0xff]  }
  0xe8   :  { %2785 = vmatpush2.bf16.msra.mxu0 %v4605_v6  ;;  %v4683_v6 = vld [vmem:[#allocation2 + $0xa24] ss:$16 sps:$4 sm:$0xff]  }
  0xe9   :  { %2826 = vmatpush2.bf16.msra.mxu1 %v4608_v7  ;;  %2786 = vmatprep.subr.bf16.mxu0 %v4613_v8  ;;  %v4678_v7 = vld [vmem:[#allocation2 + $0x820] ss:$16 sps:$4 sm:$0xff]  }
  0xea   :  { %2827 = vmatprep.subr.bf16.mxu1 %v4616_v9  ;;  %v4681_v8 = vld [vmem:[#allocation2 + $0xa20] ss:$16 sps:$4 sm:$0xff]   ;;  %v4686_v9 = vld [vmem:[#allocation2 + $0x804] ss:$16 sps:$4 sm:$0xff]  }
  0xec   :  { %2787 = vmatpush2.bf16.msra.mxu0 %v4611_v10  ;;  %v4689_v10 = vld [vmem:[#allocation2 + $0xa04] ss:$16 sps:$4 sm:$0xff]  }
  0xed   :  { %2828 = vmatpush2.bf16.msra.mxu1 %v4614_v11  ;;  %2788 = vmatprep.subr.bf16.mxu0 %v4619_v12  ;;  %v4684_v11 = vld [vmem:[#allocation2 + $0x800] ss:$16 sps:$4 sm:$0xff]  }
  0xee   :  { %2829 = vmatprep.subr.bf16.mxu1 %v4622_v13  ;;  %v4687_v12 = vld [vmem:[#allocation2 + $0xa00] ss:$16 sps:$4 sm:$0xff]   ;;  %v4692_v13 = vld [vmem:[#allocation2 + $0x9e4] ss:$16 sps:$4 sm:$0xff]  }
  0xf0   :  { %2789 = vmatpush2.bf16.msra.mxu0 %v4617_v14  ;;  %v4695_v14 = vld [vmem:[#allocation2 + $0xbe4] ss:$16 sps:$4 sm:$0xff]  }
  0xf1   :  { %2830 = vmatpush2.bf16.msra.mxu1 %v4620_v15  ;;  %2790 = vmatprep.subr.bf16.mxu0 %v4625_v18  ;;  %v4690_v15 = vld [vmem:[#allocation2 + $0x9e0] ss:$16 sps:$4 sm:$0xff]  }
  0xf2   :  { %2831 = vmatprep.subr.bf16.mxu1 %v4628_v19  ;;  %v4693_v18 = vld [vmem:[#allocation2 + $0xbe0] ss:$16 sps:$4 sm:$0xff]   ;;  %v4698_v19 = vld [vmem:[#allocation2 + $0x9c4] ss:$16 sps:$4 sm:$0xff]  }
  0xf4   :  { %2791 = vmatpush2.bf16.msra.mxu0 %v4623_v20  ;;  %v4701_v20 = vld [vmem:[#allocation2 + $0xbc4] ss:$16 sps:$4 sm:$0xff]  }
  0xf5   :  { %2832 = vmatpush2.bf16.msra.mxu1 %v4626_v21  ;;  %2792 = vmatprep.subr.bf16.mxu0 %v4631_v22  ;;  %v4696_v21 = vld [vmem:[#allocation2 + $0x9c0] ss:$16 sps:$4 sm:$0xff]  }
  0xf6   :  { %2833 = vmatprep.subr.bf16.mxu1 %v4634_v23  ;;  %v4699_v22 = vld [vmem:[#allocation2 + $0xbc0] ss:$16 sps:$4 sm:$0xff]   ;;  %v4704_v23 = vld [vmem:[#allocation2 + $0x9a4] ss:$16 sps:$4 sm:$0xff]  }
  0xf8   :  { %2793 = vmatpush2.bf16.msra.mxu0 %v4629_v24  ;;  %v4707_v24 = vld [vmem:[#allocation2 + $0xba4] ss:$16 sps:$4 sm:$0xff]  }
  0xf9   :  { %2834 = vmatpush2.bf16.msra.mxu1 %v4632_v25  ;;  %2794 = vmatprep.subr.bf16.mxu0 %v4637_v26  ;;  %v4702_v25 = vld [vmem:[#allocation2 + $0x9a0] ss:$16 sps:$4 sm:$0xff]  }
  0xfa   :  { %2835 = vmatprep.subr.bf16.mxu1 %v4640_v27  ;;  %v4705_v26 = vld [vmem:[#allocation2 + $0xba0] ss:$16 sps:$4 sm:$0xff]   ;;  %v4710_v27 = vld [vmem:[#allocation2 + $0x984] ss:$16 sps:$4 sm:$0xff]  }
  0xfc   :  { %2795 = vmatpush2.bf16.msra.mxu0 %v4635_v28  ;;  %v4713_v28 = vld [vmem:[#allocation2 + $0xb84] ss:$16 sps:$4 sm:$0xff]  }
  0xfd   :  { %2836 = vmatpush2.bf16.msra.mxu1 %v4638_v29  ;;  %2846 = vmatprep.subr.bf16.mxu0 %v4644_v30  ;;  %v4708_v29 = vld [vmem:[#allocation2 + $0x980] ss:$16 sps:$4 sm:$0xff]  }
  0xfe   :  { %2887 = vmatprep.subr.bf16.mxu1 %v4647_v31  ;;  %v4711_v30 = vld [vmem:[#allocation2 + $0xb80] ss:$16 sps:$4 sm:$0xff]   ;;  %v4716_v31 = vld [vmem:[#allocation2 + $0x964] ss:$16 sps:$4 sm:$0xff]  }
  0xff   :  { %2797 = vmatmul.mubr.bf16.vlgmr.msra.gmra.mxu0 %v5488_v32 }
 0x100   :  { %2838 = vmatmul.mubr.bf16.vlgmr.msra.gmra.mxu1 %v5492_v33  ;;  %2847 = vmatpush1.bf16.msra.mxu0 %v4642_v34  ;;  %v4719_v34 = vld [vmem:[#allocation2 + $0xb64] ss:$16 sps:$4 sm:$0xff]  }
 0x101   :  { %2888 = vmatpush1.bf16.msra.mxu1 %v4645_v35  ;;  %2848 = vmatprep.subr.bf16.mxu0 %v4650_v36  ;;  %v4714_v35 = vld [vmem:[#allocation2 + $0x960] ss:$16 sps:$4 sm:$0xff]  }
 0x102   :  { %2889 = vmatprep.subr.bf16.mxu1 %v4653_v38  ;;  %2878 = vmatprep.mubr.bf16.mxu0 %v5507_v48  ;;  %v4717_v36 = vld [vmem:[#allocation2 + $0xb60] ss:$16 sps:$4 sm:$0xff]   ;;  %v4725_v38 = vld [vmem:[#allocation2 + $0xb44] ss:$16 sps:$4 sm:$0xff]  }
 0x103   :  { %2919 = vmatprep.mubr.bf16.mxu1 %v5512_v52 }
 0x104   :  { %2849 = vmatpush1.bf16.msra.mxu0 %v4648_v41  ;;  %v4723_v41 = vld [vmem:[#allocation2 + $0xb40] ss:$16 sps:$4 sm:$0xff]  }
 0x105   :  { %2890 = vmatpush1.bf16.msra.mxu1 %v4651_v45  ;;  %2850 = vmatprep.subr.bf16.mxu0 %v4656_v46  ;;  %v4731_v45 = vld [vmem:[#allocation2 + $0xb24] ss:$16 sps:$4 sm:$0xff]   ;;  %v4726_v46 = vld [vmem:[#allocation2 + $0x920] ss:$16 sps:$4 sm:$0xff]  }
 0x106   :  { %2891 = vmatprep.subr.bf16.mxu1 %v4659_v47  ;;  %v4729_v47 = vld [vmem:[#allocation2 + $0xb20] ss:$16 sps:$4 sm:$0xff]  }
 0x108   :  { %2851 = vmatpush1.bf16.msra.mxu0 %v4654_v51  ;;  %v4737_v51 = vld [vmem:[#allocation2 + $0xb04] ss:$16 sps:$4 sm:$0xff]  }
 0x109   :  { %2892 = vmatpush1.bf16.msra.mxu1 %v4657_v49  ;;  %2852 = vmatprep.subr.bf16.mxu0 %v4662_v54  ;;  %v4732_v49 = vld [vmem:[#allocation2 + $0x900] ss:$16 sps:$4 sm:$0xff]  }
 0x10a   :  { %2893 = vmatprep.subr.bf16.mxu1 %v4665_v55  ;;  %v4735_v54 = vld [vmem:[#allocation2 + $0xb00] ss:$16 sps:$4 sm:$0xff]   ;;  %v4741_v55 = vld [vmem:[#allocation2 + $0xc64] ss:$16 sps:$4 sm:$0xff]  }
 0x10c   :  { %2853 = vmatpush1.bf16.msra.mxu0 %v4660_v56  ;;  %v4744_v56 = vld [vmem:[#allocation2 + $0xec] ss:$16 sps:$4 sm:$0xff]  }
 0x10d   :  { %2894 = vmatpush1.bf16.msra.mxu1 %v4663_v58  ;;  %2854 = vmatprep.subr.bf16.mxu0 %v4668_v59  ;;  %v5517_v58 = vpack.c.bf16 %v5498_v39, %v5498_v39  ;;  %v5521_v59 = vpack.c.bf16 %v5505_v44, %v5505_v44  ;;  %v4748_v39 = vld [vmem:[#allocation2 + $0xc8] ss:$16 sps:$4 sm:$0xff]   ;;  %v4753_v44 = vld [vmem:[#allocation2 + $0xc24] ss:$16 sps:$4 sm:$0xff]  }
 0x10e   :  { %2895 = vmatprep.subr.bf16.mxu1 %v4671_v60  ;;  %v4739_v60 = vld [vmem:[#allocation2 + $0xc60] ss:$16 sps:$4 sm:$0xff]  }
 0x110   :  { %2855 = vmatpush1.bf16.msra.mxu0 %v4666_v61  ;;  %v4742_v61 = vld [vmem:[#allocation2 + $0xe8] ss:$16 sps:$4 sm:$0xff]  }
 0x111   :  { %2896 = vmatpush1.bf16.msra.mxu1 %v4669_v63  ;;  %2856 = vmatprep.subr.bf16.mxu0 %v4674_v0  ;;  %v4747_v63 = vld [vmem:[#allocation2 + $0xc44] ss:$16 sps:$4 sm:$0xff]   ;;  %v4750_v0 = vld [vmem:[#allocation2 + $0xcc] ss:$16 sps:$4 sm:$0xff]  }
 0x112   :  { %2897 = vmatprep.subr.bf16.mxu1 %v4677_v1  ;;  %v4745_v1 = vld [vmem:[#allocation2 + $0xc40] ss:$16 sps:$4 sm:$0xff]  }
 0x114   :  { %2857 = vmatpush1.bf16.msra.mxu0 %v4672_v2  ;;  %v4756_v2 = vld [vmem:[#allocation2 + $0xac] ss:$16 sps:$4 sm:$0xff]  }
 0x115   :  { %2898 = vmatpush1.bf16.msra.mxu1 %v4675_v4  ;;  %2858 = vmatprep.subr.bf16.mxu0 %v4680_v5  ;;  %v5351_v4 = vmov 0   ;;  %v4751_v5 = vld [vmem:[#allocation2 + $0xc20] ss:$16 sps:$4 sm:$0xff]  }
 0x116   :  { %2899 = vmatprep.subr.bf16.mxu1 %v4683_v6  ;;  %v4754_v6 = vld [vmem:[#allocation2 + $0xa8] ss:$16 sps:$4 sm:$0xff]  }
 0x118   :  { %2859 = vmatpush1.bf16.msra.mxu0 %v4678_v7  ;;  %v4759_v7 = vld [vmem:[#allocation2 + $0xc04] ss:$16 sps:$4 sm:$0xff]  }
 0x119   :  { %2900 = vmatpush1.bf16.msra.mxu1 %v4681_v8  ;;  %2860 = vmatprep.subr.bf16.mxu0 %v4686_v9  ;;  %v4762_v8 = vld [vmem:[#allocation2 + $0x8c] ss:$16 sps:$4 sm:$0xff]   ;;  %v4757_v9 = vld [vmem:[#allocation2 + $0xc00] ss:$16 sps:$4 sm:$0xff]  }
 0x11a   :  { %2901 = vmatprep.subr.bf16.mxu1 %v4689_v10  ;;  %v4760_v10 = vld [vmem:[#allocation2 + $0x88] ss:$16 sps:$4 sm:$0xff]  }
 0x11c   :  { %2861 = vmatpush1.bf16.msra.mxu0 %v4684_v11  ;;  %v3871_v11 = vld.sshfl [vmem:[%s5591_s0 + $0x18] sm:$0x3 pattern:$0x76325410]  ;;  %s5354_s0 = smov [#allocation19]  }
 0x11d   :  { %2902 = vmatpush1.bf16.msra.mxu1 %v4687_v12  ;;  %2862 = vmatprep.subr.bf16.mxu0 %v4692_v13  ;;  %v4765_v12 = vld [vmem:[#allocation2 + $0x6c] ss:$16 sps:$4 sm:$0xff]   ;;  %v5530_v13 = vpack.c.bf16 %v3871_v11, %v3871_v11  ;;  %s3857_s13 = sshll.u32 %s5354_s0, 4  ;;  %s3858_s13 = int_to_ptr.vmem [resolvable:$true] %s3857_s13 }
 0x11e   :  { %2903 = vmatprep.subr.bf16.mxu1 %v4695_v14  ;;  %v4763_v14 = vld [vmem:[#allocation2 + $0x68] ss:$16 sps:$4 sm:$0xff]   ;;  %v4837_v11 = vld [vmem:[#allocation2 + $0x36c] ss:$16 sps:$4 sm:$0xff]   ;;  %s5302_s2 = scalar_lea.vmem %s3858_s13, 32  ;;  %p5307_p9 = scmp.lt.s32.totalorder %s3858_s13, %s3858_s13 }
 0x11f   :  { %p5303_p8 = scmp.ne.s32.totalorder %s3858_s13, %s5302_s2  ;;  %p5308_p10 = scmp.lt.s32.totalorder %s5302_s2, %s5302_s2 }
 0x120   :  { %2863 = vmatpush2.bf16.msra.mxu0 %v4690_v15  ;;  %v4766_v15 = vld [vmem:[#allocation2 + $0x2e8] ss:$16 sps:$4 sm:$0xff]  }
 0x121   :  { %2904 = vmatpush2.bf16.msra.mxu1 %v4693_v18  ;;  %2864 = vmatprep.subr.bf16.mxu0 %v4698_v19  ;;  %v4771_v18 = vld [vmem:[#allocation2 + $0x4c] ss:$16 sps:$4 sm:$0xff]   ;;  %p5309_p11 = por %p5308_p10, %p5307_p9 }
 0x122   :  { %2905 = vmatprep.subr.bf16.mxu1 %v4701_v20  ;;  %v4774_v19 = vld [vmem:[#allocation2 + $0x2cc] ss:$16 sps:$4 sm:$0xff]   ;;  %v4769_v20 = vld [vmem:[#allocation2 + $0x48] ss:$16 sps:$4 sm:$0xff]  }
 0x123   :  { %p5310_p12 = pnand %p5309_p11, %p5303_p8 }
 0x124   :  { %2865 = vmatpush2.bf16.msra.mxu0 %v4696_v21  ;;  %v4772_v21 = vld [vmem:[#allocation2 + $0x2c8] ss:$16 sps:$4 sm:$0xff]  }
 0x125   :  { %2906 = vmatpush2.bf16.msra.mxu1 %v4699_v22  ;;  %2866 = vmatprep.subr.bf16.mxu0 %v4704_v23  ;;  %v4777_v22 = vld [vmem:[#allocation2 + $0x2c] ss:$16 sps:$4 sm:$0xff]  }
 0x126   :  { %2907 = vmatprep.subr.bf16.mxu1 %v4707_v24  ;;  %v4780_v23 = vld [vmem:[#allocation2 + $0x2ac] ss:$16 sps:$4 sm:$0xff]   ;;  %v4775_v24 = vld [vmem:[#allocation2 + $0x28] ss:$16 sps:$4 sm:$0xff]  }
 0x128   :  { %2867 = vmatpush2.bf16.msra.mxu0 %v4702_v25  ;;  %v4778_v25 = vld [vmem:[#allocation2 + $0x2a8] ss:$16 sps:$4 sm:$0xff]  }
 0x129   :  { %2908 = vmatpush2.bf16.msra.mxu1 %v4705_v26  ;;  %2868 = vmatprep.subr.bf16.mxu0 %v4710_v27  ;;  %v4783_v26 = vld [vmem:[#allocation2 + $0xc] ss:$16 sps:$4 sm:$0xff]  }
 0x12a   :  { %2909 = vmatprep.subr.bf16.mxu1 %v4713_v28  ;;  %v4786_v27 = vld [vmem:[#allocation2 + $0x28c] ss:$16 sps:$4 sm:$0xff]   ;;  %v4781_v28 = vld [vmem:[#allocation2 + $0x8] ss:$16 sps:$4 sm:$0xff]  }
 0x12c   :  { %2869 = vmatpush2.bf16.msra.mxu0 %v4708_v29  ;;  %v4784_v29 = vld [vmem:[#allocation2 + $0x288] ss:$16 sps:$4 sm:$0xff]  }
 0x12d   :  { %2910 = vmatpush2.bf16.msra.mxu1 %v4711_v30  ;;  %2870 = vmatprep.subr.bf16.mxu0 %v4716_v31  ;;  %v4789_v30 = vld [vmem:[#allocation2 + $0x1ec] ss:$16 sps:$4 sm:$0xff]  }
 0x12e   :  { %2911 = vmatprep.subr.bf16.mxu1 %v4719_v34  ;;  %v4792_v31 = vld [vmem:[#allocation2 + $0x26c] ss:$16 sps:$4 sm:$0xff]   ;;  %v4787_v34 = vld [vmem:[#allocation2 + $0x1e8] ss:$16 sps:$4 sm:$0xff]  }
 0x130   :  { %2871 = vmatpush2.bf16.msra.mxu0 %v4714_v35  ;;  %v4795_v35 = vld [vmem:[#allocation2 + $0x1cc] ss:$16 sps:$4 sm:$0xff]  }
 0x131   :  { %2912 = vmatpush2.bf16.msra.mxu1 %v4717_v36  ;;  %2872 = vmatprep.subr.bf16.mxu0 %v4722_v37  ;;  %v4798_v36 = vld [vmem:[#allocation2 + $0x24c] ss:$16 sps:$4 sm:$0xff]   ;;  %v4793_v37 = vld [vmem:[#allocation2 + $0x1c8] ss:$16 sps:$4 sm:$0xff]  }
 0x132   :  { %2913 = vmatprep.subr.bf16.mxu1 %v4725_v38  ;;  %v4796_v38 = vld [vmem:[#allocation2 + $0x248] ss:$16 sps:$4 sm:$0xff]  }
 0x134   :  { %2873 = vmatpush2.bf16.msra.mxu0 %v4720_v40  ;;  %v4801_v40 = vld [vmem:[#allocation2 + $0x1ac] ss:$16 sps:$4 sm:$0xff]  }
 0x135   :  { %2914 = vmatpush2.bf16.msra.mxu1 %v4723_v41  ;;  %2874 = vmatprep.subr.bf16.mxu0 %v4728_v42  ;;  %v4804_v41 = vld [vmem:[#allocation2 + $0x22c] ss:$16 sps:$4 sm:$0xff]   ;;  %v4799_v42 = vld [vmem:[#allocation2 + $0x1a8] ss:$16 sps:$4 sm:$0xff]  }
 0x136   :  { %2915 = vmatprep.subr.bf16.mxu1 %v4731_v45  ;;  %v4802_v45 = vld [vmem:[#allocation2 + $0x228] ss:$16 sps:$4 sm:$0xff]  }
 0x138   :  { %2875 = vmatpush2.bf16.msra.mxu0 %v4726_v46  ;;  %v4807_v46 = vld [vmem:[#allocation2 + $0x18c] ss:$16 sps:$4 sm:$0xff]  }
 0x139   :  { %2916 = vmatpush2.bf16.msra.mxu1 %v4729_v47  ;;  %2876 = vmatprep.subr.bf16.mxu0 %v4734_v50  ;;  %v4810_v47 = vld [vmem:[#allocation2 + $0x20c] ss:$16 sps:$4 sm:$0xff]   ;;  %v4805_v50 = vld [vmem:[#allocation2 + $0x188] ss:$16 sps:$4 sm:$0xff]  }
 0x13a   :  { %2917 = vmatprep.subr.bf16.mxu1 %v4737_v51  ;;  %v4808_v51 = vld [vmem:[#allocation2 + $0x208] ss:$16 sps:$4 sm:$0xff]  }
 0x13c   :  { %2877 = vmatpush2.bf16.msra.mxu0 %v4732_v49  ;;  %v4813_v49 = vld [vmem:[#allocation2 + $0x16c] ss:$16 sps:$4 sm:$0xff]  }
 0x13d   :  { %2918 = vmatpush2.bf16.msra.mxu1 %v4735_v54  ;;  %2936 = vmatprep.subr.bf16.mxu0 %v4741_v55  ;;  %v4816_v54 = vld [vmem:[#allocation2 + $0x3ec] ss:$16 sps:$4 sm:$0xff]   ;;  %v4811_v55 = vld [vmem:[#allocation2 + $0x168] ss:$16 sps:$4 sm:$0xff]  }
 0x13e   :  { %2969 = vmatprep.subr.bf16.mxu1 %v4744_v56  ;;  %v4814_v56 = vld [vmem:[#allocation2 + $0x3e8] ss:$16 sps:$4 sm:$0xff]  }
 0x13f   :  { %2879 = vmatmul.mubr.bf16.vlgmr.msra.gmra.mxu0 %v5517_v58 }
 0x140   :  { %2920 = vmatmul.mubr.bf16.vlgmr.msra.gmra.mxu1 %v5521_v59  ;;  %2937 = vmatpush1.bf16.msra.mxu0 %v4739_v60  ;;  %v4819_v60 = vld [vmem:[#allocation2 + $0x14c] ss:$16 sps:$4 sm:$0xff]  }
 0x141   :  { %2970 = vmatpush1.bf16.msra.mxu1 %v4742_v61  ;;  %2938 = vmatprep.subr.bf16.mxu0 %v4747_v63  ;;  %v4822_v61 = vld [vmem:[#allocation2 + $0x3cc] ss:$16 sps:$4 sm:$0xff]   ;;  %v4817_v63 = vld [vmem:[#allocation2 + $0x148] ss:$16 sps:$4 sm:$0xff]  }
 0x142   :  { %2971 = vmatprep.subr.bf16.mxu1 %v4750_v0  ;;  %2960 = vmatprep.mubr.bf16.mxu0 %v5351_v4  ;;  %v4820_v0 = vld [vmem:[#allocation2 + $0x3c8] ss:$16 sps:$4 sm:$0xff]  }
 0x143   :  { %3001 = vmatprep.mubr.bf16.mxu1 %v5455_v62  ;;  %v4768_v62 = vld [vmem:[#allocation2 + $0x2ec] ss:$16 sps:$4 sm:$0xff]  }
 0x144   :  { %2939 = vmatpush1.bf16.msra.mxu0 %v4745_v1  ;;  %v4825_v1 = vld [vmem:[#allocation2 + $0x12c] ss:$16 sps:$4 sm:$0xff]  }
 0x145   :  { %2972 = vmatpush1.bf16.msra.mxu1 %v4748_v39  ;;  %2940 = vmatprep.subr.bf16.mxu0 %v4753_v44  ;;  %v4828_v39 = vld [vmem:[#allocation2 + $0x3ac] ss:$16 sps:$4 sm:$0xff]   ;;  %v4823_v44 = vld [vmem:[#allocation2 + $0x128] ss:$16 sps:$4 sm:$0xff]  }
 0x146   :  { %2973 = vmatprep.subr.bf16.mxu1 %v4756_v2  ;;  %v4826_v2 = vld [vmem:[#allocation2 + $0x3a8] ss:$16 sps:$4 sm:$0xff]  }
 0x148   :  { %2941 = vmatpush1.bf16.msra.mxu0 %v4751_v5  ;;  %v4831_v5 = vld [vmem:[#allocation2 + $0x10c] ss:$16 sps:$4 sm:$0xff]  }
 0x149   :  { %2974 = vmatpush1.bf16.msra.mxu1 %v4754_v6  ;;  %2942 = vmatprep.subr.bf16.mxu0 %v4759_v7  ;;  %v4834_v6 = vld [vmem:[#allocation2 + $0x38c] ss:$16 sps:$4 sm:$0xff]   ;;  %v4829_v7 = vld [vmem:[#allocation2 + $0x108] ss:$16 sps:$4 sm:$0xff]  }
 0x14a   :  { %2975 = vmatprep.subr.bf16.mxu1 %v4762_v8  ;;  %v4832_v8 = vld [vmem:[#allocation2 + $0x388] ss:$16 sps:$4 sm:$0xff]  }
 0x14c   :  { %2943 = vmatpush1.bf16.msra.mxu0 %v4757_v9  ;;  %v656_v9 = vld [vmem:[#allocation5] sm:$0xf] }
 0x14d   :  { %2976 = vmatpush1.bf16.msra.mxu1 %v4760_v10  ;;  %3010 = vmatprep.subr.bf16.mxu0 %v4768_v62  ;;  %v660_v10 = vsub.s32 0, %v5445_v43  ;;  %v664_v62 = vsub.s32 1, %v5445_v43 }
 0x14e   :  { %2977 = vmatprep.subr.bf16.mxu1 %v4765_v12  ;;  %v4840_v12 = vld [vmem:[#allocation2 + $0x4ec] ss:$16 sps:$4 sm:$0xff]  }
 0x14f   :  { %4272 = vmatmul.mubr.msk.bf16.vlgmr.msra.gmra.mxu0 %vm2678_vm0, %v5530_v13 }
 0x150   :  { %3011 = vmatpush1.bf16.msra.mxu0 %v4766_v15  ;;  %3042 = vmatprep.mubr.bf16.mxu0 %v5457_v3  ;;  %v4790_v3 = vld [vmem:[#allocation2 + $0x268] ss:$16 sps:$4 sm:$0xff]   ;;  %v661_v15 = vrot.slane %v656_v9, %v660_v10 }
 0x151   :  { %2978 = vmatpush1.bf16.msra.mxu1 %v4763_v14  ;;  %3012 = vmatprep.subr.bf16.mxu0 %v4774_v19  ;;  %v4835_v14 = vld [vmem:[#allocation2 + $0x368] ss:$16 sps:$4 sm:$0xff]   ;;  %v4843_v19 = vld [vmem:[#allocation2 + $0x34c] ss:$16 sps:$4 sm:$0xff]  }
 0x152   :  { %2979 = vmatprep.subr.bf16.mxu1 %v4771_v18  ;;  %v4838_v18 = vld [vmem:[#allocation2 + $0x4e8] ss:$16 sps:$4 sm:$0xff]  }
 0x153   :  { %v4892_v10 = vld [vmem:[#allocation2 + $0x648] ss:$16 sps:$4 sm:$0xff]  }
 0x154   :  { %3013 = vmatpush1.bf16.msra.mxu0 %v4772_v21  ;;  %v665_v21 = vrot.slane %v656_v9, %v664_v62  ;;  %v4889_v9 = vld [vmem:[#allocation2 + $0x5c8] ss:$16 sps:$4 sm:$0xff]  }
 0x155   :  { %2980 = vmatpush1.bf16.msra.mxu1 %v4769_v20  ;;  %3014 = vmatprep.subr.bf16.mxu0 %v4780_v23  ;;  %v4846_v20 = vld [vmem:[#allocation2 + $0x4cc] ss:$16 sps:$4 sm:$0xff]   ;;  %v4895_v62 = vld [vmem:[#allocation2 + $0x5a8] ss:$16 sps:$4 sm:$0xff]  }
 0x156   :  { %2981 = vmatprep.subr.bf16.mxu1 %v4777_v22  ;;  %v4841_v22 = vld [vmem:[#allocation2 + $0x348] ss:$16 sps:$4 sm:$0xff]  }
 0x158   :  { %3015 = vmatpush1.bf16.msra.mxu0 %v4778_v25  ;;  %v4844_v25 = vld [vmem:[#allocation2 + $0x4c8] ss:$16 sps:$4 sm:$0xff]  }
 0x159   :  { %2982 = vmatpush1.bf16.msra.mxu1 %v4775_v24  ;;  %3016 = vmatprep.subr.bf16.mxu0 %v4786_v27  ;;  %v4849_v27 = vld [vmem:[#allocation2 + $0x32c] ss:$16 sps:$4 sm:$0xff]  }
 0x15a   :  { %2983 = vmatprep.subr.bf16.mxu1 %v4783_v26 }
 0x15c   :  { %3017 = vmatpush1.bf16.msra.mxu0 %v4784_v29 }
 0x15d   :  { %2984 = vmatpush1.bf16.msra.mxu1 %v4781_v28  ;;  %3018 = vmatprep.subr.bf16.mxu0 %v4792_v31 }
 0x15e   :  { %2985 = vmatprep.subr.bf16.mxu1 %v4789_v30  ;;  %v4852_v30 = vld [vmem:[#allocation2 + $0x4ac] ss:$16 sps:$4 sm:$0xff]  }
 0x160   :  { %3019 = vmatpush1.bf16.msra.mxu0 %v4790_v3  ;;  %v4847_v3 = vld [vmem:[#allocation2 + $0x328] ss:$16 sps:$4 sm:$0xff]  }
 0x161   :  { %2986 = vmatpush2.bf16.msra.mxu1 %v4787_v34  ;;  %3020 = vmatprep.subr.bf16.mxu0 %v4798_v36 }
 0x162   :  { %2987 = vmatprep.subr.bf16.mxu1 %v4795_v35  ;;  %v4850_v35 = vld [vmem:[#allocation2 + $0x4a8] ss:$16 sps:$4 sm:$0xff]  }
 0x164   :  { %3021 = vmatpush1.bf16.msra.mxu0 %v4796_v38 }
 0x165   :  { %2988 = vmatpush2.bf16.msra.mxu1 %v4793_v37  ;;  %3022 = vmatprep.subr.bf16.mxu0 %v4804_v41  ;;  %v4855_v41 = vld [vmem:[#allocation2 + $0x30c] ss:$16 sps:$4 sm:$0xff]  }
 0x166   :  { %2989 = vmatprep.subr.bf16.mxu1 %v4801_v40 }
 0x168   :  { %3023 = vmatpush1.bf16.msra.mxu0 %v4802_v45  ;;  %v4853_v45 = vld [vmem:[#allocation2 + $0x308] ss:$16 sps:$4 sm:$0xff]  }
 0x169   :  { %2990 = vmatpush2.bf16.msra.mxu1 %v4799_v42  ;;  %3024 = vmatprep.subr.bf16.mxu0 %v4810_v47  ;;  %v4858_v42 = vld [vmem:[#allocation2 + $0x48c] ss:$16 sps:$4 sm:$0xff]  }
 0x16a   :  { %2991 = vmatprep.subr.bf16.mxu1 %v4807_v46  ;;  %v4856_v46 = vld [vmem:[#allocation2 + $0x488] ss:$16 sps:$4 sm:$0xff]   ;;  %v4861_v47 = vld [vmem:[#allocation2 + $0x46c] ss:$16 sps:$4 sm:$0xff]  }
 0x16c   :  { %3025 = vmatpush1.bf16.msra.mxu0 %v4808_v51  ;;  %v4862_v51 = vld [vmem:[#allocation2 + $0x6e8] ss:$16 sps:$4 sm:$0xff]  }
 0x16d   :  { %2992 = vmatpush2.bf16.msra.mxu1 %v4805_v50  ;;  %3026 = vmatprep.subr.bf16.mxu0 %v4816_v54  ;;  %v4859_v50 = vld [vmem:[#allocation2 + $0x468] ss:$16 sps:$4 sm:$0xff]   ;;  %v4870_v54 = vld [vmem:[#allocation2 + $0x6cc] ss:$16 sps:$4 sm:$0xff]  }
 0x16e   :  { %2993 = vmatprep.subr.bf16.mxu1 %v4813_v49  ;;  %v4867_v49 = vld [vmem:[#allocation2 + $0x44c] ss:$16 sps:$4 sm:$0xff]  }
 0x170   :  { %3027 = vmatpush2.bf16.msra.mxu0 %v4814_v56  ;;  %v4868_v56 = vld [vmem:[#allocation2 + $0x6c8] ss:$16 sps:$4 sm:$0xff]  }
 0x171   :  { %2994 = vmatpush2.bf16.msra.mxu1 %v4811_v55  ;;  %3028 = vmatprep.subr.bf16.mxu0 %v4822_v61  ;;  %v4865_v55 = vld [vmem:[#allocation2 + $0x448] ss:$16 sps:$4 sm:$0xff]   ;;  %v4876_v61 = vld [vmem:[#allocation2 + $0x6ac] ss:$16 sps:$4 sm:$0xff]  }
 0x172   :  { %2995 = vmatprep.subr.bf16.mxu1 %v4819_v60  ;;  %v4873_v60 = vld [vmem:[#allocation2 + $0x42c] ss:$16 sps:$4 sm:$0xff]  }
 0x174   :  { %3029 = vmatpush2.bf16.msra.mxu0 %v4820_v0  ;;  %v4874_v0 = vld [vmem:[#allocation2 + $0x6a8] ss:$16 sps:$4 sm:$0xff]  }
 0x175   :  { %2996 = vmatpush2.bf16.msra.mxu1 %v4817_v63  ;;  %3030 = vmatprep.subr.bf16.mxu0 %v4828_v39  ;;  %v4871_v63 = vld [vmem:[#allocation2 + $0x428] ss:$16 sps:$4 sm:$0xff]   ;;  %v4882_v39 = vld [vmem:[#allocation2 + $0x68c] ss:$16 sps:$4 sm:$0xff]  }
 0x176   :  { %2997 = vmatprep.subr.bf16.mxu1 %v4825_v1  ;;  %v4879_v1 = vld [vmem:[#allocation2 + $0x40c] ss:$16 sps:$4 sm:$0xff]  }
 0x178   :  { %3031 = vmatpush2.bf16.msra.mxu0 %v4826_v2  ;;  %v4880_v2 = vld [vmem:[#allocation2 + $0x688] ss:$16 sps:$4 sm:$0xff]  }
 0x179   :  { %2998 = vmatpush2.bf16.msra.mxu1 %v4823_v44  ;;  %3032 = vmatprep.subr.bf16.mxu0 %v4834_v6  ;;  %v4877_v44 = vld [vmem:[#allocation2 + $0x408] ss:$16 sps:$4 sm:$0xff]  }
 0x17a   :  { %2999 = vmatprep.subr.bf16.mxu1 %v4831_v5  ;;  %v4888_v5 = vld [vmem:[#allocation2 + $0x66c] ss:$16 sps:$4 sm:$0xff]   ;;  %v4883_v6 = vld [vmem:[#allocation2 + $0x5e8] ss:$16 sps:$4 sm:$0xff]  }
 0x17c   :  { %3033 = vmatpush2.bf16.msra.mxu0 %v4832_v8  ;;  %v4891_v8 = vld [vmem:[#allocation2 + $0x5cc] ss:$16 sps:$4 sm:$0xff]  }
 0x17d   :  { %3000 = vmatpush2.bf16.msra.mxu1 %v4829_v7  ;;  %3034 = vmatprep.subr.bf16.mxu0 %v4837_v11  ;;  %v4886_v7 = vld [vmem:[#allocation2 + $0x668] ss:$16 sps:$4 sm:$0xff]   ;;  %v4897_v11 = vld [vmem:[#allocation2 + $0x5ac] ss:$16 sps:$4 sm:$0xff]  }
 0x17e   :  { %3051 = vmatprep.subr.bf16.mxu1 %v4840_v12  ;;  %v4900_v12 = vld [vmem:[#allocation2 + $0x62c] ss:$16 sps:$4 sm:$0xff]  }
 0x17f   :  { %v2716_v23 = vpop.f32.mrf.mxu0 }
 0x180   :  { %v2757_v24 = vpop.f32.mrf.mxu1  ;;  %3002 = vmatmul.mubr.bf16.vlgmr.msra.gmra.mxu1 %v5461_v16  ;;  %v2717_v26 = vadd.f32 %v2716_v23, %v661_v15  ;;  %3035 = vmatpush2.bf16.msra.mxu0 %v4835_v14  ;;  %v4898_v14 = vld [vmem:[#allocation2 + $0x628] ss:$16 sps:$4 sm:$0xff]   ;;  %v4903_v15 = vld [vmem:[#allocation2 + $0x58c] ss:$16 sps:$4 sm:$0xff]  }
 0x181   :  { %3052 = vmatpush1.bf16.msra.mxu1 %v4838_v18  ;;  %v2718_v28 = vpop.f32.mrf.mxu0  ;;  %3036 = vmatprep.subr.bf16.mxu0 %v4843_v19  ;;  %v4906_v18 = vld [vmem:[#allocation2 + $0x60c] ss:$16 sps:$4 sm:$0xff]   ;;  %v4901_v19 = vld [vmem:[#allocation2 + $0x588] ss:$16 sps:$4 sm:$0xff]  }
 0x182   :  { %v2759_v29 = vpop.f32.mrf.mxu1  ;;  %3053 = vmatprep.subr.bf16.mxu1 %v4846_v20  ;;  %v5538_v31 = vadd.f32 %v2757_v24, %v2717_v26  ;;  %v2719_v34 = vadd.f32 %v2718_v28, %v665_v21  ;;  %3083 = vmatprep.mubr.bf16.mxu1 %v5478_v53  ;;  %v4864_v53 = vld [vmem:[#allocation2 + $0x6ec] ss:$16 sps:$4 sm:$0xff]   ;;  %v4904_v20 = vld [vmem:[#allocation2 + $0x608] ss:$16 sps:$4 sm:$0xff]  }
 0x183   :  { %v2720_v36 = vpop.f32.mrf.mxu0  ;;  %v4909_v21 = vld [vmem:[#allocation2 + $0x56c] ss:$16 sps:$4 sm:$0xff]   ;;  %v4907_v23 = vld [vmem:[#allocation2 + $0x568] ss:$16 sps:$4 sm:$0xff]  }
 0x184   :  { %v2761_v37 = vpop.f32.mrf.mxu1  ;;  %v5541_v16 = vadd.f32 %v2759_v29, %v2719_v34  ;;  %3037 = vmatpush2.bf16.msra.mxu0 %v4841_v22  ;;  %v4912_v22 = vld [vmem:[#allocation2 + $0x7ec] ss:$16 sps:$4 sm:$0xff]   ;;  %v4910_v24 = vld [vmem:[#allocation2 + $0x7e8] ss:$16 sps:$4 sm:$0xff]  }
 0x185   :  { %3054 = vmatpush1.bf16.msra.mxu1 %v4844_v25  ;;  %v2721_v38 = vpop.f32.mrf.mxu0  ;;  %3038 = vmatprep.subr.bf16.mxu0 %v4849_v27  ;;  %v4915_v25 = vld [vmem:[#allocation2 + $0x54c] ss:$16 sps:$4 sm:$0xff]   ;;  %v4913_v27 = vld [vmem:[#allocation2 + $0x548] ss:$16 sps:$4 sm:$0xff]  }
 0x186   :  { %v2762_v40 = vpop.f32.mrf.mxu1  ;;  %3055 = vmatprep.subr.bf16.mxu1 %v4852_v30  ;;  %v4918_v26 = vld [vmem:[#allocation2 + $0x7cc] ss:$16 sps:$4 sm:$0xff]   ;;  %v4916_v28 = vld [vmem:[#allocation2 + $0x7c8] ss:$16 sps:$4 sm:$0xff]  }
 0x187   :  { %v4921_v29 = vld [vmem:[#allocation2 + $0x52c] ss:$16 sps:$4 sm:$0xff]   ;;  %v4919_v34 = vld [vmem:[#allocation2 + $0x528] ss:$16 sps:$4 sm:$0xff]  }
 0x188   :  { %3039 = vmatpush2.bf16.msra.mxu0 %v4847_v3  ;;  %v4924_v30 = vld [vmem:[#allocation2 + $0x7ac] ss:$16 sps:$4 sm:$0xff]   ;;  %v4922_v3 = vld [vmem:[#allocation2 + $0x7a8] ss:$16 sps:$4 sm:$0xff]  }
 0x189   :  { %3056 = vmatpush1.bf16.msra.mxu1 %v4850_v35  ;;  %3040 = vmatprep.subr.bf16.mxu0 %v4855_v41  ;;  %v4927_v35 = vld [vmem:[#allocation2 + $0x50c] ss:$16 sps:$4 sm:$0xff]   ;;  %v4925_v37 = vld [vmem:[#allocation2 + $0x508] ss:$16 sps:$4 sm:$0xff]  }
 0x18a   :  { %3057 = vmatprep.subr.bf16.mxu1 %v4858_v42  ;;  %v4930_v36 = vld [vmem:[#allocation2 + $0x78c] ss:$16 sps:$4 sm:$0xff]   ;;  %v4928_v38 = vld [vmem:[#allocation2 + $0x788] ss:$16 sps:$4 sm:$0xff]  }
 0x18b   :  { %v4933_v40 = vld [vmem:[#allocation2 + $0x76c] ss:$16 sps:$4 sm:$0xff]   ;;  %v4931_v42 = vld [vmem:[#allocation2 + $0x768] ss:$16 sps:$4 sm:$0xff]  }
 0x18c   :  { %3041 = vmatpush2.bf16.msra.mxu0 %v4853_v45  ;;  %v4936_v41 = vld [vmem:[#allocation2 + $0x8ec] ss:$16 sps:$4 sm:$0xff]   ;;  %v4934_v45 = vld [vmem:[#allocation2 + $0x8e8] ss:$16 sps:$4 sm:$0xff]  }
 0x18d   :  { %3058 = vmatpush1.bf16.msra.mxu1 %v4856_v46  ;;  %3092 = vmatprep.subr.bf16.mxu0 %v4864_v53  ;;  %v4939_v46 = vld [vmem:[#allocation2 + $0x74c] ss:$16 sps:$4 sm:$0xff]  }
 0x18e   :  { %3059 = vmatprep.subr.bf16.mxu1 %v4861_v47  ;;  %v4942_v47 = vld [vmem:[#allocation2 + $0x8cc] ss:$16 sps:$4 sm:$0xff]  }
 0x18f   :  { %3043 = vmatmul.mubr.bf16.vlgmr.msra.gmra.mxu0 %v5463_v17  ;;  %v4885_v17 = vld [vmem:[#allocation2 + $0x5ec] ss:$16 sps:$4 sm:$0xff]  }
 0x190   :  { %3093 = vmatpush1.bf16.msra.mxu0 %v4862_v51  ;;  %3124 = vmatprep.mubr.bf16.mxu0 %v5482_v57  ;;  %v4894_v57 = vld [vmem:[#allocation2 + $0x64c] ss:$16 sps:$4 sm:$0xff]  }
 0x191   :  { %3060 = vmatpush1.bf16.msra.mxu1 %v4859_v50  ;;  %3094 = vmatprep.subr.bf16.mxu0 %v4870_v54  ;;  %v4940_v54 = vld [vmem:[#allocation2 + $0x8c8] ss:$16 sps:$4 sm:$0xff]  }
 0x192   :  { %3061 = vmatprep.subr.bf16.mxu1 %v4867_v49  ;;  %v4937_v49 = vld [vmem:[#allocation2 + $0x748] ss:$16 sps:$4 sm:$0xff]  }
 0x194   :  { %3095 = vmatpush1.bf16.msra.mxu0 %v4868_v56 }
 0x195   :  { %3062 = vmatpush1.bf16.msra.mxu1 %v4865_v55  ;;  %3096 = vmatprep.subr.bf16.mxu0 %v4876_v61  ;;  %v4948_v61 = vld [vmem:[#allocation2 + $0x8ac] ss:$16 sps:$4 sm:$0xff]  }
 0x196   :  { %3063 = vmatprep.subr.bf16.mxu1 %v4873_v60  ;;  %v4945_v60 = vld [vmem:[#allocation2 + $0x72c] ss:$16 sps:$4 sm:$0xff]  }
 0x198   :  { %3097 = vmatpush1.bf16.msra.mxu0 %v4874_v0 }
 0x199   :  { %3064 = vmatpush1.bf16.msra.mxu1 %v4871_v63  ;;  %3098 = vmatprep.subr.bf16.mxu0 %v4882_v39 }
 0x19a   :  { %3065 = vmatprep.subr.bf16.mxu1 %v4879_v1 }
 0x19c   :  { %3099 = vmatpush1.bf16.msra.mxu0 %v4880_v2 }
 0x19d   :  { %3066 = vmatpush1.bf16.msra.mxu1 %v4877_v44  ;;  %3100 = vmatprep.subr.bf16.mxu0 %v4888_v5  ;;  %v4946_v44 = vld [vmem:[#allocation2 + $0x8a8] ss:$16 sps:$4 sm:$0xff]   ;;  %v4951_v5 = vld [vmem:[#allocation2 + $0x70c] ss:$16 sps:$4 sm:$0xff]  }
 0x19e   :  { %3067 = vmatprep.subr.bf16.mxu1 %v4885_v17 }
 0x1a0   :  { %3101 = vmatpush1.bf16.msra.mxu0 %v4886_v7  ;;  %v4949_v7 = vld [vmem:[#allocation2 + $0x708] ss:$16 sps:$4 sm:$0xff]  }
 0x1a1   :  { %3068 = vmatpush2.bf16.msra.mxu1 %v4883_v6  ;;  %3102 = vmatprep.subr.bf16.mxu0 %v4894_v57  ;;  %v4954_v6 = vld [vmem:[#allocation2 + $0x88c] ss:$16 sps:$4 sm:$0xff]   ;;  %v4955_v57 = vld [vmem:[#allocation2 + $0x868] ss:$16 sps:$4 sm:$0xff]  }
 0x1a2   :  { %3069 = vmatprep.subr.bf16.mxu1 %v4891_v8  ;;  %v4960_v8 = vld [vmem:[#allocation2 + $0xaec] ss:$16 sps:$4 sm:$0xff]  }
 0x1a4   :  { %3103 = vmatpush1.bf16.msra.mxu0 %v4892_v10  ;;  %v4963_v10 = vld [vmem:[#allocation2 + $0x84c] ss:$16 sps:$4 sm:$0xff]  }
 0x1a5   :  { %3070 = vmatpush2.bf16.msra.mxu1 %v4889_v9  ;;  %3104 = vmatprep.subr.bf16.mxu0 %v4900_v12  ;;  %v4958_v9 = vld [vmem:[#allocation2 + $0xae8] ss:$16 sps:$4 sm:$0xff]  }
 0x1a6   :  { %3071 = vmatprep.subr.bf16.mxu1 %v4897_v11  ;;  %v4966_v11 = vld [vmem:[#allocation2 + $0xacc] ss:$16 sps:$4 sm:$0xff]   ;;  %v4961_v12 = vld [vmem:[#allocation2 + $0x848] ss:$16 sps:$4 sm:$0xff]  }
 0x1a8   :  { %3105 = vmatpush1.bf16.msra.mxu0 %v4898_v14  ;;  %v4969_v14 = vld [vmem:[#allocation2 + $0x82c] ss:$16 sps:$4 sm:$0xff]  }
 0x1a9   :  { %3072 = vmatpush2.bf16.msra.mxu1 %v4895_v62  ;;  %3106 = vmatprep.subr.bf16.mxu0 %v4906_v18  ;;  %v4964_v62 = vld [vmem:[#allocation2 + $0xac8] ss:$16 sps:$4 sm:$0xff]  }
 0x1aa   :  { %3073 = vmatprep.subr.bf16.mxu1 %v4903_v15  ;;  %v4972_v15 = vld [vmem:[#allocation2 + $0xaac] ss:$16 sps:$4 sm:$0xff]   ;;  %v4967_v18 = vld [vmem:[#allocation2 + $0x828] ss:$16 sps:$4 sm:$0xff]  }
 0x1ac   :  { %3107 = vmatpush1.bf16.msra.mxu0 %v4904_v20  ;;  %v4975_v20 = vld [vmem:[#allocation2 + $0x80c] ss:$16 sps:$4 sm:$0xff]  }
 0x1ad   :  { %3074 = vmatpush2.bf16.msra.mxu1 %v4901_v19  ;;  %3108 = vmatprep.subr.bf16.mxu0 %v4912_v22  ;;  %v4970_v19 = vld [vmem:[#allocation2 + $0xaa8] ss:$16 sps:$4 sm:$0xff]  }
 0x1ae   :  { %3075 = vmatprep.subr.bf16.mxu1 %v4909_v21  ;;  %v4978_v21 = vld [vmem:[#allocation2 + $0xa8c] ss:$16 sps:$4 sm:$0xff]   ;;  %v4976_v22 = vld [vmem:[#allocation2 + $0xa88] ss:$16 sps:$4 sm:$0xff]  }
 0x1b0   :  { %3109 = vmatpush2.bf16.msra.mxu0 %v4910_v24  ;;  %v4984_v24 = vld [vmem:[#allocation2 + $0xa6c] ss:$16 sps:$4 sm:$0xff]  }
 0x1b1   :  { %3076 = vmatpush2.bf16.msra.mxu1 %v4907_v23  ;;  %3110 = vmatprep.subr.bf16.mxu0 %v4918_v26  ;;  %v4981_v23 = vld [vmem:[#allocation2 + $0x9ec] ss:$16 sps:$4 sm:$0xff]  }
 0x1b2   :  { %3077 = vmatprep.subr.bf16.mxu1 %v4915_v25  ;;  %v4979_v25 = vld [vmem:[#allocation2 + $0x9e8] ss:$16 sps:$4 sm:$0xff]   ;;  %v4987_v26 = vld [vmem:[#allocation2 + $0x9cc] ss:$16 sps:$4 sm:$0xff]  }
 0x1b4   :  { %3111 = vmatpush2.bf16.msra.mxu0 %v4916_v28  ;;  %v4985_v28 = vld [vmem:[#allocation2 + $0x9c8] ss:$16 sps:$4 sm:$0xff]  }
 0x1b5   :  { %3078 = vmatpush2.bf16.msra.mxu1 %v4913_v27  ;;  %3112 = vmatprep.subr.bf16.mxu0 %v4924_v30  ;;  %v4990_v27 = vld [vmem:[#allocation2 + $0xa4c] ss:$16 sps:$4 sm:$0xff]  }
 0x1b6   :  { %3079 = vmatprep.subr.bf16.mxu1 %v4921_v29  ;;  %v4988_v29 = vld [vmem:[#allocation2 + $0xa48] ss:$16 sps:$4 sm:$0xff]   ;;  %v4993_v30 = vld [vmem:[#allocation2 + $0x9ac] ss:$16 sps:$4 sm:$0xff]  }
 0x1b8   :  { %3113 = vmatpush2.bf16.msra.mxu0 %v4922_v3  ;;  %v4991_v3 = vld [vmem:[#allocation2 + $0x9a8] ss:$16 sps:$4 sm:$0xff]  }
 0x1b9   :  { %3080 = vmatpush2.bf16.msra.mxu1 %v4919_v34  ;;  %3114 = vmatprep.subr.bf16.mxu0 %v4930_v36  ;;  %v4996_v34 = vld [vmem:[#allocation2 + $0xa2c] ss:$16 sps:$4 sm:$0xff]  }
 0x1ba   :  { %3081 = vmatprep.subr.bf16.mxu1 %v4927_v35  ;;  %v4994_v35 = vld [vmem:[#allocation2 + $0xa28] ss:$16 sps:$4 sm:$0xff]   ;;  %v4999_v36 = vld [vmem:[#allocation2 + $0x98c] ss:$16 sps:$4 sm:$0xff]  }
 0x1bc   :  { %3115 = vmatpush2.bf16.msra.mxu0 %v4928_v38  ;;  %v4997_v38 = vld [vmem:[#allocation2 + $0x988] ss:$16 sps:$4 sm:$0xff]  }
 0x1bd   :  { %3082 = vmatpush2.bf16.msra.mxu1 %v4925_v37  ;;  %3116 = vmatprep.subr.bf16.mxu0 %v4933_v40  ;;  %v5002_v37 = vld [vmem:[#allocation2 + $0xa0c] ss:$16 sps:$4 sm:$0xff]   ;;  %v5000_v40 = vld [vmem:[#allocation2 + $0xa08] ss:$16 sps:$4 sm:$0xff]  }
 0x1be   :  { %3133 = vmatprep.subr.bf16.mxu1 %v4936_v41  ;;  %v5005_v41 = vld [vmem:[#allocation2 + $0x96c] ss:$16 sps:$4 sm:$0xff]  }
 0x1bf   :  { %v2798_v53 = vpop.f32.mrf.mxu0 }
 0x1c0   :  { %v2839_v50 = vpop.f32.mrf.mxu1  ;;  %3084 = vmatmul.mubr.bf16.vlgmr.msra.gmra.mxu1 %v5488_v32  ;;  %v2799_v51 = vadd.f32 %v2798_v53, %v5538_v31  ;;  %3117 = vmatpush2.bf16.msra.mxu0 %v4931_v42  ;;  %v4943_v31 = vld [vmem:[#allocation2 + $0x728] ss:$16 sps:$4 sm:$0xff]   ;;  %v5008_v42 = vld [vmem:[#allocation2 + $0xbec] ss:$16 sps:$4 sm:$0xff]  }
 0x1c1   :  { %3134 = vmatpush1.bf16.msra.mxu1 %v4934_v45  ;;  %v2800_v55 = vpop.f32.mrf.mxu0  ;;  %3118 = vmatprep.subr.bf16.mxu0 %v4939_v46  ;;  %v5003_v45 = vld [vmem:[#allocation2 + $0x968] ss:$16 sps:$4 sm:$0xff]   ;;  %v5014_v53 = vld [vmem:[#allocation2 + $0xbcc] ss:$16 sps:$4 sm:$0xff]  }
 0x1c2   :  { %v2841_v56 = vpop.f32.mrf.mxu1  ;;  %3135 = vmatprep.subr.bf16.mxu1 %v4942_v47  ;;  %v5547_v63 = vadd.f32 %v2839_v50, %v2799_v51  ;;  %v2801_v0 = vadd.f32 %v2800_v55, %v5541_v16  ;;  %3165 = vmatprep.mubr.bf16.mxu1 %v5507_v48  ;;  %v4952_v16 = vld [vmem:[#allocation2 + $0x888] ss:$16 sps:$4 sm:$0xff]   ;;  %v4957_v48 = vld [vmem:[#allocation2 + $0x86c] ss:$16 sps:$4 sm:$0xff]  }
 0x1c3   :  { %v2802_v1 = vpop.f32.mrf.mxu0  ;;  %v5006_v46 = vld [vmem:[#allocation2 + $0xbe8] ss:$16 sps:$4 sm:$0xff]   ;;  %v5011_v47 = vld [vmem:[#allocation2 + $0x94c] ss:$16 sps:$4 sm:$0xff]  }
 0x1c4   :  { %v2843_v32 = vpop.f32.mrf.mxu1  ;;  %v5551_v39 = vadd.f32 %v2841_v56, %v2801_v0  ;;  %3119 = vmatpush2.bf16.msra.mxu0 %v4937_v49  ;;  %v5009_v50 = vld [vmem:[#allocation2 + $0x948] ss:$16 sps:$4 sm:$0xff]   ;;  %v5017_v49 = vld [vmem:[#allocation2 + $0x92c] ss:$16 sps:$4 sm:$0xff]  }
 0x1c5   :  { %3136 = vmatpush1.bf16.msra.mxu1 %v4940_v54  ;;  %v2803_v2 = vpop.f32.mrf.mxu0  ;;  %3120 = vmatprep.subr.bf16.mxu0 %v4945_v60  ;;  %v5012_v51 = vld [vmem:[#allocation2 + $0xbc8] ss:$16 sps:$4 sm:$0xff]   ;;  %v5020_v54 = vld [vmem:[#allocation2 + $0xbac] ss:$16 sps:$4 sm:$0xff]  }
 0x1c6   :  { %v2844_v17 = vpop.f32.mrf.mxu1  ;;  %3137 = vmatprep.subr.bf16.mxu1 %v4948_v61  ;;  %v5015_v55 = vld [vmem:[#allocation2 + $0x928] ss:$16 sps:$4 sm:$0xff]   ;;  %v5023_v60 = vld [vmem:[#allocation2 + $0x90c] ss:$16 sps:$4 sm:$0xff]  }
 0x1c7   :  { %v5018_v56 = vld [vmem:[#allocation2 + $0xba8] ss:$16 sps:$4 sm:$0xff]   ;;  %v5026_v61 = vld [vmem:[#allocation2 + $0xb8c] ss:$16 sps:$4 sm:$0xff]  }
 0x1c8   :  { %3121 = vmatpush2.bf16.msra.mxu0 %v4943_v31  ;;  %v5021_v0 = vld [vmem:[#allocation2 + $0x908] ss:$16 sps:$4 sm:$0xff]   ;;  %v5029_v32 = vld [vmem:[#allocation2 + $0xb6c] ss:$16 sps:$4 sm:$0xff]  }
 0x1c9   :  { %3138 = vmatpush1.bf16.msra.mxu1 %v4946_v44  ;;  %3122 = vmatprep.subr.bf16.mxu0 %v4951_v5  ;;  %v5024_v1 = vld [vmem:[#allocation2 + $0xb88] ss:$16 sps:$4 sm:$0xff]   ;;  %v5032_v31 = vld [vmem:[#allocation2 + $0xc6c] ss:$16 sps:$4 sm:$0xff]  }
 0x1ca   :  { %3139 = vmatprep.subr.bf16.mxu1 %v4954_v6  ;;  %v5027_v44 = vld [vmem:[#allocation2 + $0xb68] ss:$16 sps:$4 sm:$0xff]   ;;  %v5035_v17 = vld [vmem:[#allocation2 + $0xb4c] ss:$16 sps:$4 sm:$0xff]  }
 0x1cb   :  { %v5030_v2 = vld [vmem:[#allocation2 + $0xc68] ss:$16 sps:$4 sm:$0xff]   ;;  %v5038_v5 = vld [vmem:[#allocation2 + $0xc4c] ss:$16 sps:$4 sm:$0xff]  }
 0x1cc   :  { %3123 = vmatpush2.bf16.msra.mxu0 %v4949_v7 }
 0x1cd   :  { %3140 = vmatpush1.bf16.msra.mxu1 %v4952_v16  ;;  %3174 = vmatprep.subr.bf16.mxu0 %v4960_v8  ;;  %v5033_v16 = vld [vmem:[#allocation2 + $0xb48] ss:$16 sps:$4 sm:$0xff]  }
 0x1ce   :  { %3141 = vmatprep.subr.bf16.mxu1 %v4957_v48  ;;  %v5036_v48 = vld [vmem:[#allocation2 + $0xc48] ss:$16 sps:$4 sm:$0xff]  }
 0x1cf   :  { %3125 = vmatmul.mubr.bf16.vlgmr.msra.gmra.mxu0 %v5492_v33  ;;  %v4973_v33 = vld [vmem:[#allocation2 + $0x808] ss:$16 sps:$4 sm:$0xff]  }
 0x1d0   :  { %3175 = vmatpush1.bf16.msra.mxu0 %v4958_v9  ;;  %3206 = vmatprep.mubr.bf16.mxu0 %v5512_v52  ;;  %v4982_v52 = vld [vmem:[#allocation2 + $0xa68] ss:$16 sps:$4 sm:$0xff]   ;;  %v5041_v9 = vld [vmem:[#allocation2 + $0xb2c] ss:$16 sps:$4 sm:$0xff]  }
 0x1d1   :  { %3142 = vmatpush1.bf16.msra.mxu1 %v4955_v57  ;;  %3176 = vmatprep.subr.bf16.mxu0 %v4966_v11 }
 0x1d2   :  { %3143 = vmatprep.subr.bf16.mxu1 %v4963_v10  ;;  %v5044_v10 = vld [vmem:[#allocation2 + $0xc2c] ss:$16 sps:$4 sm:$0xff]  }
 0x1d4   :  { %3177 = vmatpush1.bf16.msra.mxu0 %v4964_v62  ;;  %v5039_v62 = vld [vmem:[#allocation2 + $0xb28] ss:$16 sps:$4 sm:$0xff]  }
 0x1d5   :  { %3144 = vmatpush1.bf16.msra.mxu1 %v4961_v12  ;;  %3178 = vmatprep.subr.bf16.mxu0 %v4972_v15 }
 0x1d6   :  { %3145 = vmatprep.subr.bf16.mxu1 %v4969_v14  ;;  %v5042_v14 = vld [vmem:[#allocation2 + $0xc28] ss:$16 sps:$4 sm:$0xff]  }
 0x1d8   :  { %3179 = vmatpush1.bf16.msra.mxu0 %v4970_v19  ;;  %v5050_v19 = vld [vmem:[#allocation2 + $0xc0c] ss:$16 sps:$4 sm:$0xff]  }
 0x1d9   :  { %3146 = vmatpush1.bf16.msra.mxu1 %v4967_v18  ;;  %3180 = vmatprep.subr.bf16.mxu0 %v4978_v21  ;;  %v5047_v18 = vld [vmem:[#allocation2 + $0xb0c] ss:$16 sps:$4 sm:$0xff]   ;;  %v5048_v21 = vld [vmem:[#allocation2 + $0xc08] ss:$16 sps:$4 sm:$0xff]  }
 0x1da   :  { %3147 = vmatprep.subr.bf16.mxu1 %v4975_v20  ;;  %v5045_v20 = vld [vmem:[#allocation2 + $0xb08] ss:$16 sps:$4 sm:$0xff]  }
 0x1dc   :  { %3181 = vmatpush1.bf16.msra.mxu0 %v4976_v22  ;;  %v5052_v22 = vld [vmem:[#allocation7 + $0x38] sm:$0xff]  }
 0x1dd   :  { %3148 = vmatpush1.bf16.msra.mxu1 %v4973_v33  ;;  %3182 = vmatprep.subr.bf16.mxu0 %v4984_v24  ;;  %v5051_v33 = vld [vmem:[#allocation7 + $0x78] sm:$0xff]  }
 0x1de   :  { %3149 = vmatprep.subr.bf16.mxu1 %v4981_v23  ;;  %v5053_v23 = vld [vmem:[#allocation7 + $0x70] sm:$0xff]  }
 0x1e0   :  { %3183 = vmatpush1.bf16.msra.mxu0 %v4982_v52  ;;  %v5054_v52 = vld [vmem:[#allocation7 + $0x30] sm:$0xff]  }
 0x1e1   :  { %3150 = vmatpush2.bf16.msra.mxu1 %v4979_v25  ;;  %3184 = vmatprep.subr.bf16.mxu0 %v4990_v27  ;;  %v5055_v27 = vld [vmem:[#allocation7 + $0x68] sm:$0xff]  }
 0x1e2   :  { %3151 = vmatprep.subr.bf16.mxu1 %v4987_v26 }
 0x1e4   :  { %3185 = vmatpush1.bf16.msra.mxu0 %v4988_v29 }
 0x1e5   :  { %3152 = vmatpush2.bf16.msra.mxu1 %v4985_v28  ;;  %3186 = vmatprep.subr.bf16.mxu0 %v4996_v34 }
 0x1e6   :  { %3153 = vmatprep.subr.bf16.mxu1 %v4993_v30  ;;  %v5056_v30 = vld [vmem:[#allocation7 + $0x28] sm:$0xff]  }
 0x1e8   :  { %3187 = vmatpush1.bf16.msra.mxu0 %v4994_v35  ;;  %v5067_v35 = vld [vmem:[#allocation7 + $0xf8] sm:$0xff]  }
 0x1e9   :  { %3154 = vmatpush2.bf16.msra.mxu1 %v4991_v3  ;;  %3188 = vmatprep.subr.bf16.mxu0 %v5002_v37  ;;  %v5057_v3 = vld [vmem:[#allocation7 + $0x60] sm:$0xff]   ;;  %v5059_v37 = vld [vmem:[#allocation7 + $0x58] sm:$0xff]  }
 0x1ea   :  { %3155 = vmatprep.subr.bf16.mxu1 %v4999_v36  ;;  %v5068_v36 = vld [vmem:[#allocation7 + $0xb8] sm:$0xff]  }
 0x1ec   :  { %3189 = vmatpush1.bf16.msra.mxu0 %v5000_v40  ;;  %v5061_v40 = vld [vmem:[#allocation7 + $0x50] sm:$0xff]  }
 0x1ed   :  { %3156 = vmatpush2.bf16.msra.mxu1 %v4997_v38  ;;  %3190 = vmatprep.subr.bf16.mxu0 %v5008_v42  ;;  %v5060_v38 = vld [vmem:[#allocation7 + $0x18] sm:$0xff]   ;;  %v5062_v42 = vld [vmem:[#allocation7 + $0x10] sm:$0xff]  }
 0x1ee   :  { %3157 = vmatprep.subr.bf16.mxu1 %v5005_v41 }
 0x1f0   :  { %3191 = vmatpush2.bf16.msra.mxu0 %v5006_v46 }
 0x1f1   :  { %3158 = vmatpush2.bf16.msra.mxu1 %v5003_v45  ;;  %3192 = vmatprep.subr.bf16.mxu0 %v5014_v53  ;;  %v5063_v45 = vld [vmem:[#allocation7 + $0x48] sm:$0xff]  }
 0x1f2   :  { %3159 = vmatprep.subr.bf16.mxu1 %v5011_v47  ;;  %v5064_v47 = vld [vmem:[#allocation7 + $0x8] sm:$0xff]  }
 0x1f4   :  { %3193 = vmatpush2.bf16.msra.mxu0 %v5012_v51  ;;  %v5066_v51 = vld [vmem:[#allocation7] sm:$0xff]  }
 0x1f5   :  { %3160 = vmatpush2.bf16.msra.mxu1 %v5009_v50  ;;  %3194 = vmatprep.subr.bf16.mxu0 %v5020_v54  ;;  %v5065_v50 = vld [vmem:[#allocation7 + $0x40] sm:$0xff]  }
 0x1f6   :  { %3161 = vmatprep.subr.bf16.mxu1 %v5017_v49 }
 0x1f8   :  { %3195 = vmatpush2.bf16.msra.mxu0 %v5018_v56 }
 0x1f9   :  { %3162 = vmatpush2.bf16.msra.mxu1 %v5015_v55  ;;  %3196 = vmatprep.subr.bf16.mxu0 %v5026_v61  ;;  %v5069_v55 = vld [vmem:[#allocation7 + $0xf0] sm:$0xff]   ;;  %v5071_v61 = vld [vmem:[#allocation7 + $0xe8] sm:$0xff]  }
 0x1fa   :  { %3163 = vmatprep.subr.bf16.mxu1 %v5023_v60 }
 0x1fc   :  { %3197 = vmatpush2.bf16.msra.mxu0 %v5024_v1 }
 0x1fd   :  { %3164 = vmatpush2.bf16.msra.mxu1 %v5021_v0  ;;  %3198 = vmatprep.subr.bf16.mxu0 %v5029_v32  ;;  %v5072_v0 = vld [vmem:[#allocation7 + $0xa8] sm:$0xff]  }
 0x1fe   :  { %3223 = vmatprep.subr.bf16.mxu1 %v5032_v31  ;;  %v5073_v31 = vld [vmem:[#allocation7 + $0xe0] sm:$0xff]  }
 0x1ff   :  { %v5555_v6 = vpop.f32.mrf.mxu0 }
 0x200   :  { %v5557_v7 = vpop.f32.mrf.mxu1  ;;  %3166 = vmatmul.mubr.bf16.vlgmr.msra.gmra.mxu1 %v5517_v58  ;;  %3199 = vmatpush2.bf16.msra.mxu0 %v5027_v44  ;;  %v2881_v41 = vadd.f32 %v5555_v6, %v5547_v63  ;;  %v5070_v63 = vld [vmem:[#allocation7 + $0xb0] sm:$0xff]   ;;  %v5074_v44 = vld [vmem:[#allocation7 + $0xa0] sm:$0xff]   ;;  %v5076_v6 = vld [vmem:[#allocation7 + $0x98] sm:$0xff]  }
 0x201   :  { %3224 = vmatpush1.bf16.msra.mxu1 %v5030_v2  ;;  %v2882_v8 = vpop.f32.mrf.mxu0  ;;  %3200 = vmatprep.subr.bf16.mxu0 %v5035_v17  ;;  %v5075_v2 = vld [vmem:[#allocation7 + $0xd8] sm:$0xff]   ;;  %v668_v17 = vsub.s32 2, %v5445_v43 }
 0x202   :  { %v2923_v57 = vpop.f32.mrf.mxu1  ;;  %3225 = vmatprep.subr.bf16.mxu1 %v5038_v5  ;;  %3247 = vmatprep.mubr.bf16.mxu1 %v5351_v4  ;;  %v2883_v4 = vadd.f32 %v2882_v8, %v5551_v39  ;;  %v2922_v46 = vadd.f32 %v5557_v7, %v2881_v41  ;;  %v672_v5 = vsub.s32 3, %v5445_v43  ;;  %v5101_v7 = vld [vmem:[#allocation5] sm:$0xf]  ;;  %v5077_v8 = vld [vmem:[#allocation7 + $0xd0] sm:$0xff]  }
 0x203   :  { %v2884_v11 = vpop.f32.mrf.mxu0 }
 0x204   :  { %v2925_v12 = vpop.f32.mrf.mxu1  ;;  %3201 = vmatpush2.bf16.msra.mxu0 %v5033_v16  ;;  %v2924_v25 = vadd.f32 %v2923_v57, %v2883_v4  ;;  %v669_v16 = vrot.slane %v5101_v7, %v668_v17  ;;  %v5084_v4 = vld [vmem:[#allocation10 + $0x30] sm:$0xff]  }
 0x205   :  { %3226 = vmatpush1.bf16.msra.mxu1 %v5036_v48  ;;  %v2885_v15 = vpop.f32.mrf.mxu0  ;;  %3202 = vmatprep.subr.bf16.mxu0 %v5041_v9  ;;  %v673_v48 = vrot.slane %v5101_v7, %v672_v5  ;;  %v5078_v9 = vld [vmem:[#allocation7 + $0x90] sm:$0xff]   ;;  %v5090_v7 = vld [vmem:[#allocation10] sm:$0xff]  }
 0x206   :  { %v2926_v58 = vpop.f32.mrf.mxu1  ;;  %3227 = vmatprep.subr.bf16.mxu1 %v5044_v10  ;;  %v5088_v5 = vld [vmem:[#allocation10 + $0x10] sm:$0xff]  }
 0x207   :  { %v5080_v58 = vld [vmem:[#allocation7 + $0x88] sm:$0xff]  }
 0x208   :  { %3203 = vmatpush2.bf16.msra.mxu0 %v5039_v62 }
 0x209   :  { %3228 = vmatpush1.bf16.msra.mxu1 %v5042_v14  ;;  %3204 = vmatprep.subr.bf16.mxu0 %v5047_v18  ;;  %v5079_v14 = vld [vmem:[#allocation7 + $0xc8] sm:$0xff]  }
 0x20a   :  { %3229 = vmatprep.subr.bf16.mxu1 %v5050_v19  ;;  %v5081_v19 = vld [vmem:[#allocation7 + $0xc0] sm:$0xff]  }
 0x20c   :  { %3205 = vmatpush2.bf16.msra.mxu0 %v5045_v20  ;;  %v5082_v20 = vld [vmem:[#allocation7 + $0x80] sm:$0xff]  }
 0x20d   :  { %3230 = vmatpush1.bf16.msra.mxu1 %v5048_v21  ;;  %4327 = vmatprep.subr.bf16.mxu0 %v5051_v33  ;;  %v5083_v21 = vld [vmem:[#allocation10 + $0x38] sm:$0xff]   ;;  %v5352_v33 = vmov 0.0  }
 0x20e   :  { %4349 = vmatprep.subr.bf16.mxu1 %v5067_v35 }
 0x20f   :  { %v2962_v24 = vpop.f32.mrf.mxu0  ;;  %3207 = vmatmul.mubr.bf16.vlgmr.msra.gmra.mxu0 %v5521_v59 }
 0x210   :  { %4273 = vmatmul.mubr.msk.bf16.vlgmr.msra.gmra.mxu1 %vm2678_vm0, %v5530_v13  ;;  %4328 = vmatpush3.bf16.msra.mxu0 %v5052_v22  ;;  %v5058_v13 = vld [vmem:[#allocation7 + $0x20] sm:$0xff]   ;;  %v2963_v53 = vadd.f32 %v2962_v24, %v2922_v46  ;;  %v5085_v22 = vld [vmem:[#allocation10 + $0x28] sm:$0xff]  }
 0x211   :  { %v2964_v26 = vpop.f32.mrf.mxu0  ;;  %4329 = vmatprep.subr.bf16.mxu0 %v5053_v23  ;;  %4350 = vmatpush3.bf16.msra.mxu1 %v5068_v36  ;;  %v5086_v24 = vld [vmem:[#allocation10 + $0x20] sm:$0xff]  }
 0x212   :  { %v2965_v28 = vadd.f32 %v2964_v26, %v2924_v25  ;;  %v3256_v49 = vmax.f32 %v2963_v53, 0.0  ;;  %4351 = vmatprep.subr.bf16.mxu1 %v5069_v55 }
 0x213   :  { %v2966_v29 = vpop.f32.mrf.mxu0 }
 0x214   :  { %v3257_v39 = vmax.f32 %v2965_v28, 0.0  ;;  %4330 = vmatpush3.bf16.msra.mxu0 %v5054_v52  ;;  %v3260_v54 = vpack.c.bf16 %v3256_v49, %v3256_v49  ;;  %v5087_v28 = vld [vmem:[#allocation10 + $0x18] sm:$0xff]  }
 0x215   :  { %v2967_v34 = vpop.f32.mrf.mxu0  ;;  %4331 = vmatprep.subr.bf16.mxu0 %v5055_v27  ;;  %4352 = vmatpush3.bf16.msra.mxu1 %v5070_v63 }
 0x216   :  { %v3261_v59 = vpack.c.bf16 %v3257_v39, %v3257_v39  ;;  %4353 = vmatprep.subr.bf16.mxu1 %v5071_v61 }
 0x218   :  { %4332 = vmatpush3.bf16.msra.mxu0 %v5056_v30  ;;  %3559 = vmatprep.mubr.bf16.mxu0 %v3261_v59 }
 0x219   :  { %4333 = vmatprep.subr.bf16.mxu0 %v5057_v3  ;;  %4354 = vmatpush3.bf16.msra.mxu1 %v5072_v0 }
 0x21a   :  { %4355 = vmatprep.subr.bf16.mxu1 %v5073_v31 }
 0x21c   :  { %4334 = vmatpush3.bf16.msra.mxu0 %v5058_v13 }
 0x21d   :  { %4335 = vmatprep.subr.bf16.mxu0 %v5059_v37  ;;  %4356 = vmatpush3.bf16.msra.mxu1 %v5074_v44 }
 0x21e   :  { %4357 = vmatprep.subr.bf16.mxu1 %v5075_v2 }
 0x220   :  { %4336 = vmatpush3.bf16.msra.mxu0 %v5060_v38 }
 0x221   :  { %4337 = vmatprep.subr.bf16.mxu0 %v5061_v40  ;;  %4358 = vmatpush3.bf16.msra.mxu1 %v5076_v6  ;;  %v5089_v6 = vld [vmem:[#allocation10 + $0x8] sm:$0xff]  }
 0x222   :  { %4359 = vmatprep.subr.bf16.mxu1 %v5077_v8  ;;  %v5093_v8 = vld [vmem:[#allocation13 + $0x28] sm:$0xff]  }
 0x224   :  { %4338 = vmatpush3.bf16.msra.mxu0 %v5062_v42 }
 0x225   :  { %4339 = vmatprep.subr.bf16.mxu0 %v5063_v45  ;;  %4360 = vmatpush3.bf16.msra.mxu1 %v5078_v9  ;;  %v5095_v9 = vld [vmem:[#allocation13 + $0x18] sm:$0xff]  }
 0x226   :  { %4361 = vmatprep.subr.bf16.mxu1 %v5079_v14 }
 0x228   :  { %4340 = vmatpush3.bf16.msra.mxu0 %v5064_v47 }
 0x229   :  { %4341 = vmatprep.subr.bf16.mxu0 %v5065_v50  ;;  %4362 = vmatpush3.bf16.msra.mxu1 %v5080_v58 }
 0x22a   :  { %4363 = vmatprep.subr.bf16.mxu1 %v5081_v19 }
 0x22c   :  { %4342 = vmatpush3.bf16.msra.mxu0 %v5066_v51 }
 0x22d   :  { %4364 = vmatpush3.bf16.msra.mxu1 %v5082_v20  ;;  %4389 = vmatprep.subr.bf16.mxu0 %v5352_v33 }
 0x22e   :  { %4409 = vmatprep.subr.bf16.mxu1 %v5352_v33 }
 0x22f   :  { %3560 = vmatmul.mubr.bf16.vlgmr.msra.gmra.mxu0 %v3260_v54 }
 0x230   :  { %4390 = vmatpush3.bf16.msra.mxu0 %v5083_v21  ;;  %4405 = vmatprep.mubr.msk.bf16.mxu0 %vm5353_vm1, %v5352_v33  ;;  %v5097_v21 = vld [vmem:[#allocation13 + $0x8] sm:$0xff]  }
 0x231   :  { %4391 = vmatprep.subr.bf16.mxu0 %v5352_v33 }
 0x234   :  { %4392 = vmatpush3.bf16.msra.mxu0 %v5084_v4  ;;  %v5098_v4 = vld [vmem:[#allocation13] sm:$0xff]  }
 0x235   :  { %4393 = vmatprep.subr.bf16.mxu0 %v5352_v33 }
 0x238   :  { %4394 = vmatpush3.bf16.msra.mxu0 %v5085_v22  ;;  %v4307_v22 = vld [vmem:[#allocation11] ss:$0 sm:$0xff] }
 0x239   :  { %4395 = vmatprep.subr.bf16.mxu0 %v5352_v33 }
 0x23c   :  { %4396 = vmatpush3.bf16.msra.mxu0 %v5086_v24 }
 0x23d   :  { %4397 = vmatprep.subr.bf16.mxu0 %v5352_v33 }
 0x240   :  { %v3003_v56 = vpop.f32.mrf.mxu1  ;;  %4398 = vmatpush3.bf16.msra.mxu0 %v5087_v28 }
 0x241   :  { %v3004_v57 = vadd.f32 %v3003_v56, %v669_v16  ;;  %4399 = vmatprep.subr.bf16.mxu0 %v5352_v33  ;;  %v5091_v16 = vld [vmem:[#allocation13 + $0x38] sm:$0xff]  }
 0x242   :  { %v3005_v60 = vpop.f32.mrf.mxu1 }
 0x243   :  { %v3006_v11 = vadd.f32 %v3005_v60, %v673_v48  ;;  %v5092_v48 = vld [vmem:[#allocation13 + $0x30] sm:$0xff]  }
 0x244   :  { %v3007_v1 = vpop.f32.mrf.mxu1  ;;  %4400 = vmatpush3.bf16.msra.mxu0 %v5088_v5 }
 0x245   :  { %4401 = vmatprep.subr.bf16.mxu0 %v5352_v33 }
 0x246   :  { %v3008_v32 = vpop.f32.mrf.mxu1 }
 0x248   :  { %4402 = vmatpush3.bf16.msra.mxu0 %v5089_v6 }
 0x249   :  { %4403 = vmatprep.subr.bf16.mxu0 %v5352_v33 }
 0x24c   :  { %4404 = vmatpush3.bf16.msra.mxu0 %v5090_v7 }
 0x24f   :  { %v3044_v10 = vpop.f32.mrf.mxu0 }
 0x250   :  { %v3045_v12 = vadd.f32 %v3044_v10, %v3004_v57  ;;  %v5094_v57 = vld [vmem:[#allocation13 + $0x20] sm:$0xff]   ;;  %v5096_v10 = vld [vmem:[#allocation13 + $0x10] sm:$0xff]  }
 0x251   :  { %v3046_v62 = vpop.f32.mrf.mxu0 }
 0x252   :  { %v3047_v15 = vadd.f32 %v3046_v62, %v3006_v11  ;;  %v4274_v11 = vld [vmem:[#allocation8] ss:$0 sm:$0xff] }
 0x253   :  { %v3048_v43 = vpop.f32.mrf.mxu0 }
 0x255   :  { %v3049_v18 = vpop.f32.mrf.mxu0 }
 0x280   :  { %v3085_v23 = vpop.f32.mrf.mxu1 }
 0x281   :  { %v3086_v25 = vadd.f32 %v3085_v23, %v3045_v12 }
 0x282   :  { %v3087_v52 = vpop.f32.mrf.mxu1 }
 0x283   :  { %v3088_v26 = vadd.f32 %v3087_v52, %v3047_v15 }
 0x284   :  { %v3089_v27 = vpop.f32.mrf.mxu1 }
 0x286   :  { %v3090_v29 = vpop.f32.mrf.mxu1 }
 0x287   :  { %v4316_v29 = vld [vmem:[#allocation14] ss:$0 sm:$0xff] }
 0x28f   :  { %v3126_v39 = vpop.f32.mrf.mxu0 }
 0x290   :  { %v3127_v37 = vadd.f32 %v3126_v39, %v3086_v25 }
 0x291   :  { %v3128_v30 = vpop.f32.mrf.mxu0 }
 0x292   :  { %v3129_v38 = vadd.f32 %v3128_v30, %v3088_v26 }
 0x293   :  { %v3130_v34 = vpop.f32.mrf.mxu0 }
 0x295   :  { %v3131_v3 = vpop.f32.mrf.mxu0 }
 0x2c0   :  { %v3167_v35 = vpop.f32.mrf.mxu1 }
 0x2c1   :  { %v3168_v40 = vadd.f32 %v3167_v35, %v3127_v37 }
 0x2c2   :  { %v3169_v36 = vpop.f32.mrf.mxu1 }
 0x2c3   :  { %v3170_v45 = vadd.f32 %v3169_v36, %v3129_v38  ;;  %v4325_v36 = vld [vmem:[#allocation16] ss:$0 sm:$0xff] }
 0x2c4   :  { %v3171_v59 = vpop.f32.mrf.mxu1 }
 0x2c5   :  { %v4326_v59 = vld [vmem:[#allocation17] ss:$0 sm:$0xff] }
 0x2c6   :  { %v3172_v13 = vpop.f32.mrf.mxu1 }
 0x2cf   :  { %v3208_v41 = vpop.f32.mrf.mxu0 }
 0x2d0   :  { %v3249_v42 = vpop.f32.mrf.mxu1  ;;  %v3209_v46 = vadd.f32 %v3208_v41, %v3168_v40 }
 0x2d1   :  { %v3210_v47 = vpop.f32.mrf.mxu0 }
 0x2d2   :  { %v3251_v53 = vpop.f32.mrf.mxu1  ;;  %v3250_v50 = vadd.f32 %v3249_v42, %v3209_v46  ;;  %v3211_v51 = vadd.f32 %v3210_v47, %v3170_v45 }
 0x2d3   :  { %v3212_v49 = vpop.f32.mrf.mxu0 }
 0x2d4   :  { %v3253_v54 = vpop.f32.mrf.mxu1  ;;  %v3252_v55 = vadd.f32 %v3251_v53, %v3211_v51  ;;  %v3258_v63 = vmax.f32 %v3250_v50, 0.0 }
 0x2d5   :  { %v3213_v56 = vpop.f32.mrf.mxu0 }
 0x2d6   :  { %v3254_v60 = vpop.f32.mrf.mxu1  ;;  %v3259_v61 = vmax.f32 %v3252_v55, 0.0  ;;  %v3262_v1 = vpack.c.bf16 %v3258_v63, %v3258_v63 }
 0x2d8   :  { %v3263_v0 = vpack.c.bf16 %v3259_v61, %v3259_v61 }
 0x2da   :  { %3599 = vmatprep.mubr.bf16.mxu1 %v3263_v0 }
 0x2db   :  { %3600 = vmatmul.mubr.bf16.vlgmr.msra.gmra.mxu1 %v3262_v1 }
 0x2dc   :  { %4425 = vmatprep.mubr.msk.bf16.mxu1 %vm5353_vm1, %v5352_v33  ;;  %4410 = vmatpush3.bf16.msra.mxu1 %v5091_v16 }
 0x2dd   :  { %4411 = vmatprep.subr.bf16.mxu1 %v5352_v33 }
 0x2e0   :  { %4412 = vmatpush3.bf16.msra.mxu1 %v5092_v48 }
 0x2e1   :  { %4413 = vmatprep.subr.bf16.mxu1 %v5352_v33 }
 0x2e4   :  { %4414 = vmatpush3.bf16.msra.mxu1 %v5093_v8 }
 0x2e5   :  { %4415 = vmatprep.subr.bf16.mxu1 %v5352_v33 }
 0x2e8   :  { %4416 = vmatpush3.bf16.msra.mxu1 %v5094_v57 }
 0x2e9   :  { %4417 = vmatprep.subr.bf16.mxu1 %v5352_v33 }
 0x2ec   :  { %4418 = vmatpush3.bf16.msra.mxu1 %v5095_v9 }
 0x2ed   :  { %4419 = vmatprep.subr.bf16.mxu1 %v5352_v33 }
 0x2ef   :  { %v4343_v32 = vpop.f32.mrf.mxu0 }
 0x2f0   :  { %4420 = vmatpush3.bf16.msra.mxu1 %v5096_v10 }
 0x2f1   :  { %v4344_v31 = vpop.f32.mrf.mxu0  ;;  %4421 = vmatprep.subr.bf16.mxu1 %v5352_v33 }
 0x2f2   :  { %v4345_v44 = vadd.f32 %v4344_v31, %v4343_v32 }
 0x2f3   :  { %v4346_v2 = vpop.f32.mrf.mxu0 }
 0x2f4   :  { %v3562_v14 = vadd.f32 %v4345_v44, %v4274_v11  ;;  %4422 = vmatpush3.bf16.msra.mxu1 %v5097_v21 }
 0x2f5   :  { %v4347_v17 = vpop.f32.mrf.mxu0  ;;  %4423 = vmatprep.subr.bf16.mxu1 %v5352_v33 }
 0x2f8   :  { %4424 = vmatpush3.bf16.msra.mxu1 %v5098_v4 }
 0x39b   :  { %v4365_v12 = vpop.f32.mrf.mxu1 }
 0x39d   :  { %v4366_v62 = vpop.f32.mrf.mxu1 }
 0x39e   :  { %v4367_v15 = vadd.f32 %v4366_v62, %v4365_v12 }
 0x39f   :  { %v4368_v58 = vpop.f32.mrf.mxu1 }
 0x3a0   :  { %v3602_v43 = vadd.f32 %v4367_v15, %v3562_v14 }
 0x3a1   :  { %v4369_v18 = vpop.f32.mrf.mxu1 }
 0x3a2   :  { %v3607_v19 = vmax.f32 %v3602_v43, 0.0 }
 0x3a4   :  { %v3608_v20 = vpack.c.bf16 %v3607_v19, %v3607_v19 }
 0x3a6   :  { %4406 = vmatmul.mubr.bf16.vlgmr.msra.gmra.mxu0 %v3608_v20 }
 0x466   :  { %v3714_v23 = vpop.f32.mrf.mxu0 }
 0x467   :  { %v3715_v24 = vadd.f32 %v4307_v22, %v3714_v23 }
 0x468   :  { %v4407_v25 = vpop.f32.mrf.mxu0 }
 0x469   :  { %v3720_v52 = vmax.f32 %v3715_v24, 0.0 }
 0x46a   :  { %v3717_v26 = vpop.f32.mrf.mxu0 }
 0x46b   :  { %v3721_v27 = vpack.c.bf16 %v3720_v52, %v3720_v52 }
 0x46c   :  { %v4408_v28 = vpop.f32.mrf.mxu0 }
 0x46d   :  { %4426 = vmatmul.mubr.bf16.vlgmr.msra.gmra.mxu1 %v3721_v27 }
 0x52d   :  { %v3827_v39 = vpop.f32.mrf.mxu1 }
 0x52e   :  { %v3828_v30 = vadd.f32 %v4316_v29, %v3827_v39 }
 0x52f   :  { %v4427_v34 = vpop.f32.mrf.mxu1 }
 0x530   :  { %5099 = vtanh.f32 %v3828_v30 }
 0x531   :  { %v3830_v3 = vpop.f32.mrf.mxu1 }
 0x533   :  { %v4428_v35 = vpop.f32.mrf.mxu1 }
 0x53d   :  { %v5100_v33 = vpop.eup %5099 }
 0x53e   :  { %v3841_v13 = vmul.f32 %v5100_v33, %v4325_v36 }
 0x540   :  { %v3849_v37 = vadd.f32 %v4326_v59, %v3841_v13 }
 0x542   :  { %3850 = vst [vmem:[#allocation19] sm:$0x3] %v3849_v37 }
 0x543   :  { %5313 = shalt.err (!%p5310_p12)
}
 0x544   :  { %3860 = dma.vmem_to_hbm [thread:$0]  %s3858_s13, 32, %s5602_s11, [#allocation4]  }
 0x545   :  { %5334 = dma.done.wait [#allocation4], 32  }
 0x546   :  { %5335 = vsyncadd [#allocation4], 4294967264 }
 0x547   :  { %3864 = vsyncpa [#allocation3], 1 }
 0x548   :  { %3865 = vsyncpa [#allocation6], 1 }
 0x549   :  { %3866 = vsyncpa [#allocation9], 1 }
 0x54a   :  { %3867 = vsyncpa [#allocation12], 1 }
 0x54b   :  { %3868 = vsyncpa [#allocation15], 1 }
 0x54c   :  { %3869 = vsyncpa [#allocation18], 1 }
 0x54d   :  { %3870 = vsyncpa [#allocation4], 1 }

</bundles_post_ra>
